<compile_context>
chip_gen: v6e
topology: v6e:2x2x1
jax: 0.10.0
libtpu: 0.0.40
codegen_flags: <defaults>
</compile_context>

<pallas_src>
import jax
import jax.numpy as jnp
from jax import lax
from jax.experimental import pallas as pl
from jax.experimental.pallas import tpu as pltpu

B, T, D = 2, 8, 32          # batch, time, size
BT = B * T
H = 4                       # attention heads
DK = D // H                 # per-head dim
FF = 64                     # feed-forward hidden units
K = 3                       # depthwise conv kernel (odd, non-causal)
EPS = 1e-5
LANES = 128

# ---------------------------------------------------------------------------
# Static packing layout for the two parameter slabs.
# ---------------------------------------------------------------------------
VEC_ROWS = [
    ("ln_mac_g", D), ("ln_mac_b", D),
    ("ffm_b1", FF), ("ffm_b2", D),
    ("ln_mha_g", D), ("ln_mha_b", D),
    ("b_qkv", 3 * D), ("bo", D),
    ("ln_conv_g", D), ("ln_conv_b", D),
    ("pw1_b", 2 * D), ("dw_b", D),
    ("cln_g", D), ("cln_b", D),
    ("pw2_b", D),
    ("ln_ff_g", D), ("ln_ff_b", D),
    ("ff_b1", FF), ("ff_b2", D),
    ("ln_fin_g", D), ("ln_fin_b", D),
    ("dw_w0", D), ("dw_w1", D), ("dw_w2", D),
]
VEC_IDX = {name: i for i, (name, _) in enumerate(VEC_ROWS)}
VEC_W = dict(VEC_ROWS)
NV = ((len(VEC_ROWS) + 7) // 8) * 8          # 24 rows (already multiple of 8)

MAT_DEFS = [
    ("ffm_w1", D, FF), ("ffm_w2", FF, D),
    ("w_qkv", D, 3 * D), ("wo", D, D),
    ("pw1_w", D, 2 * D), ("pw2_w", D, D),
    ("ff_w1", D, FF), ("ff_w2", FF, D),
]
MAT_OFF = {}
_row = 0
for _name, _r, _c in MAT_DEFS:
    MAT_OFF[_name] = (_row, _r, _c)
    _row += _r
NM = ((_row + 7) // 8) * 8                   # 320 rows


def _layer_norm(x, g, b):
    mu = jnp.mean(x, axis=-1, keepdims=True)
    var = jnp.mean((x - mu) ** 2, axis=-1, keepdims=True)
    return (x - mu) * lax.rsqrt(var + EPS) * g + b


def _silu(x):
    return x * jax.nn.sigmoid(x)


# ---------------------------------------------------------------------------
# Parameters (same logical layout as the torch module, weights pre-transposed
# so the kernel computes y = x @ W + b) and their packed form.
# ---------------------------------------------------------------------------
def make_params(key):
    ks = iter(jax.random.split(key, 64))
    nrm = lambda shape: (0.05 * jax.random.normal(next(ks), shape)).astype(jnp.float32)
    ones = lambda shape: jnp.ones(shape, jnp.float32)
    zeros = lambda shape: jnp.zeros(shape, jnp.float32)
    p = {}
    p["ln_mac_g"], p["ln_mac_b"] = ones((1, D)), zeros((1, D))
    p["ffm_w1"], p["ffm_b1"] = nrm((D, FF)), nrm((1, FF))
    p["ffm_w2"], p["ffm_b2"] = nrm((FF, D)), nrm((1, D))
    p["ln_mha_g"], p["ln_mha_b"] = ones((1, D)), zeros((1, D))
    p["wq"], p["bq"] = nrm((D, D)), nrm((1, D))
    p["wk"], p["bk"] = nrm((D, D)), nrm((1, D))
    p["wv"], p["bv"] = nrm((D, D)), nrm((1, D))
    p["wo"], p["bo"] = nrm((D, D)), nrm((1, D))
    p["ln_conv_g"], p["ln_conv_b"] = ones((1, D)), zeros((1, D))
    p["pw1_w"], p["pw1_b"] = nrm((D, 2 * D)), nrm((1, 2 * D))   # Conv1d(D,2D,1)
    p["dw_w"], p["dw_b"] = nrm((K, D)), nrm((1, D))             # depthwise (D,1,K)->(K,D)
    p["cln_g"], p["cln_b"] = ones((1, D)), zeros((1, D))
    p["pw2_w"], p["pw2_b"] = nrm((D, D)), nrm((1, D))           # Conv1d(D,D,1)
    p["ln_ff_g"], p["ln_ff_b"] = ones((1, D)), zeros((1, D))
    p["ff_w1"], p["ff_b1"] = nrm((D, FF)), nrm((1, FF))
    p["ff_w2"], p["ff_b2"] = nrm((FF, D)), nrm((1, D))
    p["ln_fin_g"], p["ln_fin_b"] = ones((1, D)), zeros((1, D))
    return p


def pack_params(p):
    """Pack every parameter into two dense (rows, 128) f32 slabs (outside Pallas)."""
    vec_src = {
        "ln_mac_g": p["ln_mac_g"], "ln_mac_b": p["ln_mac_b"],
        "ffm_b1": p["ffm_b1"], "ffm_b2": p["ffm_b2"],
        "ln_mha_g": p["ln_mha_g"], "ln_mha_b": p["ln_mha_b"],
        "b_qkv": jnp.concatenate([p["bq"], p["bk"], p["bv"]], axis=-1),
        "bo": p["bo"],
        "ln_conv_g": p["ln_conv_g"], "ln_conv_b": p["ln_conv_b"],
        "pw1_b": p["pw1_b"], "dw_b": p["dw_b"],
        "cln_g": p["cln_g"], "cln_b": p["cln_b"],
        "pw2_b": p["pw2_b"],
        "ln_ff_g": p["ln_ff_g"], "ln_ff_b": p["ln_ff_b"],
        "ff_b1": p["ff_b1"], "ff_b2": p["ff_b2"],
        "ln_fin_g": p["ln_fin_g"], "ln_fin_b": p["ln_fin_b"],
        "dw_w0": p["dw_w"][0:1], "dw_w1": p["dw_w"][1:2], "dw_w2": p["dw_w"][2:3],
    }
    vecs = jnp.zeros((NV, LANES), jnp.float32)
    for name, w in VEC_ROWS:
        vecs = vecs.at[VEC_IDX[name], :w].set(vec_src[name].reshape(w))

    mat_src = {
        "ffm_w1": p["ffm_w1"], "ffm_w2": p["ffm_w2"],
        "w_qkv": jnp.concatenate([p["wq"], p["wk"], p["wv"]], axis=-1),
        "wo": p["wo"],
        "pw1_w": p["pw1_w"], "pw2_w": p["pw2_w"],
        "ff_w1": p["ff_w1"], "ff_w2": p["ff_w2"],
    }
    mats = jnp.zeros((NM, LANES), jnp.float32)
    for name, r, c in MAT_DEFS:
        off = MAT_OFF[name][0]
        mats = mats.at[off:off + r, :c].set(mat_src[name])
    return vecs, mats


# ---------------------------------------------------------------------------
# The Pallas kernel: whole batch, one invocation, 5 input / 2 output refs.
# ---------------------------------------------------------------------------
def _conformer_kernel(x_ref, attm_ref, padm_ref, vecs_ref, mats_ref, y_ref, kv_ref):
    def vec(name):                                   # (1, w) static ref slice
        i, w = VEC_IDX[name], VEC_W[name]
        return vecs_ref[i:i + 1, :w]

    def mat(name):                                   # (r, c) static ref slice
        off, r, c = MAT_OFF[name]
        return mats_ref[off:off + r, :c]

    x = x_ref[...].reshape(BT, D)                    # (B*T, D)
    keep = attm_ref[...] > 0.0                       # (B, 1, T) key mask
    keep_pad = padm_ref[...] > 0.0                   # (B*T, 1) conv padding mask

    # ---- macaron feed-forward (ff_scale = 0.5, dropout = identity) ----
    res = x
    h = _layer_norm(x, vec("ln_mac_g"), vec("ln_mac_b"))
    h = _silu(h @ mat("ffm_w1") + vec("ffm_b1")) @ mat("ffm_w2") + vec("ffm_b2")
    x = res + 0.5 * h

    # ---- multi-headed self-attention (plain MHA; pos_emb unused) ----
    res = x
    xn = _layer_norm(x, vec("ln_mha_g"), vec("ln_mha_b"))
    qkv = xn @ mat("w_qkv") + vec("b_qkv")           # fused Q|K|V: (BT, 3D)
    q, k, v = qkv[:, :D], qkv[:, D:2 * D], qkv[:, 2 * D:]
    scale = 1.0 / (DK ** 0.5)
    ctx_heads = []
    for hh in range(H):                              # static, H=4; batched over B
        sl = slice(hh * DK, (hh + 1) * DK)
        qh = q[:, sl].reshape(B, T, DK)
        kh = k[:, sl].reshape(B, T, DK)
        vh = v[:, sl].reshape(B, T, DK)
        s = jnp.einsum("btd,bsd->bts", qh, kh,
                       preferred_element_type=jnp.float32) * scale
        s = jnp.where(keep, s, -1e30)
        m = jnp.max(s, axis=-1, keepdims=True)
        e = jnp.where(keep, jnp.exp(s - m), 0.0)
        inv = pl.reciprocal(jnp.sum(e, axis=-1, keepdims=True), approx=True)
        a = jnp.where(keep, e * inv, 0.0)            # fully-masked rows -> 0
        ch = jnp.einsum("bts,bsd->btd", a, vh,
                        preferred_element_type=jnp.float32)
        ctx_heads.append(ch.reshape(BT, DK))
    ctx = jnp.concatenate(ctx_heads, axis=-1)        # (BT, D)
    x = res + (ctx @ mat("wo") + vec("bo"))

    # new_att_cache = cat(k, v, -1): one lane-dense (B, T, 2D) store;
    # head-major layout is produced outside the kernel.
    kv_ref[...] = jnp.concatenate([k, v], axis=-1).reshape(B, T, 2 * D)

    # ---- convolution module: pw-conv -> GLU -> dw-conv -> LN -> SiLU -> pw ----
    res = x
    xn = _layer_norm(x, vec("ln_conv_g"), vec("ln_conv_b"))
    xc = jnp.where(keep_pad, xn, 0.0)                # zero padded frames
    y1 = xc @ mat("pw1_w") + vec("pw1_b")            # (BT, 2D)
    g = (y1[:, :D] * jax.nn.sigmoid(y1[:, D:])).reshape(B, T, D)   # GLU
    zero_row = jnp.zeros_like(g[:, :1, :])
    g_prev = jnp.concatenate([zero_row, g[:, :T - 1, :]], axis=1)  # g[t-1]
    g_next = jnp.concatenate([g[:, 1:, :], zero_row], axis=1)      # g[t+1]
    z = (g_prev * vec("dw_w0") + g * vec("dw_w1") + g_next * vec("dw_w2")
         + vec("dw_b"))                              # depthwise conv, K=3, pad=1
    z = _silu(_layer_norm(z, vec("cln_g"), vec("cln_b")))
    z = z.reshape(BT, D) @ mat("pw2_w") + vec("pw2_b")
    z = jnp.where(keep_pad, z, 0.0)
    x = res + z

    # ---- feed-forward ----
    res = x
    h = _layer_norm(x, vec("ln_ff_g"), vec("ln_ff_b"))
    h = _silu(h @ mat("ff_w1") + vec("ff_b1")) @ mat("ff_w2") + vec("ff_b2")
    x = res + 0.5 * h

    # ---- final norm (present because conv_module is present) ----
    x = _layer_norm(x, vec("ln_fin_g"), vec("ln_fin_b"))
    y_ref[...] = x.reshape(B, T, D)


def conformer_encoder_layer(x, mask, pos_emb, mask_pad, params):
    """Returns (y, mask, new_att_cache, new_cnn_cache) like the torch module."""
    del pos_emb  # plain MultiHeadedAttention ignores pos_emb
    vecs, mats = pack_params(params)
    att_mask = mask.astype(jnp.float32)                          # (B, 1, T)
    pad_mask = mask_pad[:, 0, :].astype(jnp.float32).reshape(BT, 1)

    vmem = lambda: pl.BlockSpec(memory_space=pltpu.MemorySpace.VMEM)
    y, kv = pl.pallas_call(
        _conformer_kernel,
        in_specs=[vmem() for _ in range(5)],
        out_specs=(vmem(), vmem()),
        out_shape=(jax.ShapeDtypeStruct((B, T, D), jnp.float32),
                   jax.ShapeDtypeStruct((B, T, 2 * D), jnp.float32)),
    )(x, att_mask, pad_mask, vecs, mats)

    # (B, T, 2D) -> (B, H, T, 2*DK) with plain XLA ops (keeps the in-kernel
    # writeback a single dense store).
    k = kv[..., :D].reshape(B, T, H, DK)
    v = kv[..., D:].reshape(B, T, H, DK)
    att_cache = jnp.transpose(jnp.concatenate([k, v], axis=-1), (0, 2, 1, 3))
    new_cnn_cache = jnp.zeros((0, 0, 0), x.dtype)  # non-causal conv -> empty cache
    return y, mask, att_cache, new_cnn_cache


# ---------------------------------------------------------------------------
# Plain-JAX reference (per batch element) for a correctness check.
# ---------------------------------------------------------------------------
def reference(x, mask, mask_pad, p):
    w_qkv = jnp.concatenate([p["wq"], p["wk"], p["wv"]], axis=-1)
    b_qkv = jnp.concatenate([p["bq"], p["bk"], p["bv"]], axis=-1)
    ys, caches = [], []
    for b in range(B):
        xb = x[b]
        keep = mask[b, 0] > 0
        keep_pad = (mask_pad[b, 0] > 0)[:, None]

        res = xb
        h = _layer_norm(xb, p["ln_mac_g"], p["ln_mac_b"])
        h = _silu(h @ p["ffm_w1"] + p["ffm_b1"]) @ p["ffm_w2"] + p["ffm_b2"]
        xb = res + 0.5 * h

        res = xb
        xn = _layer_norm(xb, p["ln_mha_g"], p["ln_mha_b"])
        qkv = xn @ w_qkv + b_qkv
        q, k, v = qkv[:, :D], qkv[:, D:2 * D], qkv[:, 2 * D:]
        scale = 1.0 / (DK ** 0.5)
        ctx, cache_h = [], []
        for hh in range(H):
            sl = slice(hh * DK, (hh + 1) * DK)
            qh, kh, vh = q[:, sl], k[:, sl], v[:, sl]
            s = (qh @ kh.T) * scale
            s = jnp.where(keep[None, :], s, -1e30)
            a = jax.nn.softmax(s, axis=-1)
            a = jnp.where(keep[None, :], a, 0.0)
            ctx.append(a @ vh)
            cache_h.append(jnp.concatenate([kh, vh], axis=-1))
        xb = res + (jnp.concatenate(ctx, axis=-1) @ p["wo"] + p["bo"])
        caches.append(jnp.stack(cache_h, axis=0))

        res = xb
        xn = _layer_norm(xb, p["ln_conv_g"], p["ln_conv_b"])
        xc = jnp.where(keep_pad, xn, 0.0)
        y1 = xc @ p["pw1_w"] + p["pw1_b"]
        g = y1[:, :D] * jax.nn.sigmoid(y1[:, D:])
        padlen = (K - 1) // 2
        z = jnp.zeros((T, D), jnp.float32)
        for j in range(K):
            off = j - padlen
            lo, hi = max(0, -off), min(T, T - off)
            z = z.at[lo:hi].add(g[lo + off:hi + off] * p["dw_w"][j][None, :])
        z = z + p["dw_b"]
        z = _silu(_layer_norm(z, p["cln_g"], p["cln_b"]))
        z = z @ p["pw2_w"] + p["pw2_b"]
        z = jnp.where(keep_pad, z, 0.0)
        xb = res + z

        res = xb
        h = _layer_norm(xb, p["ln_ff_g"], p["ln_ff_b"])
        h = _silu(h @ p["ff_w1"] + p["ff_b1"]) @ p["ff_w2"] + p["ff_b2"]
        xb = res + 0.5 * h

        ys.append(_layer_norm(xb, p["ln_fin_g"], p["ln_fin_b"]))
    return jnp.stack(ys, 0), jnp.stack(caches, 0)


if __name__ == "__main__":
    key = jax.random.PRNGKey(0)
    kx, kp = jax.random.split(key)
    x = jax.random.normal(kx, (B, T, D), jnp.float32)
    mask = jnp.ones((B, 1, T), dtype=bool)        # (batch, 1, time)
    mask_pad = jnp.ones((B, 1, T), dtype=bool)    # (batch, 1, time)
    pos_emb = jnp.zeros((1, T, D), jnp.float32)   # accepted, unused (plain MHA)
    params = make_params(kp)

    y, mask_out, att_cache, cnn_cache = conformer_encoder_layer(
        x, mask, pos_emb, mask_pad, params)
    jax.block_until_ready((y, att_cache))

    y_ref, cache_ref = reference(x, mask, mask_pad, params)
    assert y.shape == (B, T, D) and att_cache.shape == (B, H, T, 2 * DK)
    assert cnn_cache.shape == (0, 0, 0)
    assert jnp.allclose(y, y_ref, atol=5e-3, rtol=5e-3)
    assert jnp.allclose(att_cache, cache_ref, atol=5e-3, rtol=5e-3)
    print("KERNEL_OK")
</pallas_src>

<mosaic_0001>
module attributes {stable_mosaic.version = 11 : i64} {
  func.func @_conformer_kernel(%arg0: memref<2x8x32xf32, #tpu.memory_space<vmem>>, %arg1: memref<2x1x8xf32, #tpu.memory_space<vmem>>, %arg2: memref<16x1xf32, #tpu.memory_space<vmem>>, %arg3: memref<24x128xf32, #tpu.memory_space<vmem>>, %arg4: memref<320x128xf32, #tpu.memory_space<vmem>>, %arg5: memref<2x8x32xf32, #tpu.memory_space<vmem>>, %arg6: memref<2x8x64xf32, #tpu.memory_space<vmem>>) attributes {dimension_semantics = [], scalar_prefetch = 0 : i64, scratch_operands = 0 : i64, tpu.core_type = #tpu.core_type<tc>} {
    %c0 = arith.constant 0 : index
    %c0_0 = arith.constant 0 : index
    %c0_1 = arith.constant 0 : index
    %0 = vector.load %arg0[%c0, %c0_0, %c0_1] : memref<2x8x32xf32, #tpu.memory_space<vmem>>, vector<2x8x32xf32>
    %1 = vector.shape_cast %0 : vector<2x8x32xf32> to vector<16x32xf32>
    %c0_2 = arith.constant 0 : index
    %c0_3 = arith.constant 0 : index
    %c0_4 = arith.constant 0 : index
    %2 = vector.load %arg1[%c0_2, %c0_3, %c0_4] : memref<2x1x8xf32, #tpu.memory_space<vmem>>, vector<2x1x8xf32>
    %cst = arith.constant 0.000000e+00 : f32
    %3 = vector.broadcast %cst : f32 to vector<2x1x8xf32>
    %4 = arith.cmpf ogt, %2, %3 : vector<2x1x8xf32>
    %c0_5 = arith.constant 0 : index
    %c0_6 = arith.constant 0 : index
    %5 = vector.load %arg2[%c0_5, %c0_6] : memref<16x1xf32, #tpu.memory_space<vmem>>, vector<16x1xf32>
    %cst_7 = arith.constant 0.000000e+00 : f32
    %6 = vector.broadcast %cst_7 : f32 to vector<16x1xf32>
    %7 = arith.cmpf ogt, %5, %6 : vector<16x1xf32>
    %c0_8 = arith.constant 0 : index
    %c0_9 = arith.constant 0 : index
    %8 = vector.load %arg3[%c0_8, %c0_9] : memref<24x128xf32, #tpu.memory_space<vmem>>, vector<1x32xf32>
    %c1 = arith.constant 1 : index
    %c0_10 = arith.constant 0 : index
    %9 = vector.load %arg3[%c1, %c0_10] : memref<24x128xf32, #tpu.memory_space<vmem>>, vector<1x32xf32>
    %cst_11 = arith.constant dense<0.000000e+00> : vector<16xf32>
    %10 = vector.multi_reduction <add>, %1, %cst_11 [1] : vector<16x32xf32> to vector<16xf32>
    %11 = vector.shape_cast %10 : vector<16xf32> to vector<16x1xf32>
    %cst_12 = arith.constant 3.200000e+01 : f32
    %12 = vector.broadcast %cst_12 : f32 to vector<16x1xf32>
    %13 = arith.divf %11, %12 : vector<16x1xf32>
    %14 = vector.broadcast %13 : vector<16x1xf32> to vector<16x32xf32>
    %15 = arith.subf %1, %14 : vector<16x32xf32>
    %16 = arith.mulf %15, %15 : vector<16x32xf32>
    %cst_13 = arith.constant dense<0.000000e+00> : vector<16xf32>
    %17 = vector.multi_reduction <add>, %16, %cst_13 [1] : vector<16x32xf32> to vector<16xf32>
    %18 = vector.shape_cast %17 : vector<16xf32> to vector<16x1xf32>
    %cst_14 = arith.constant 3.200000e+01 : f32
    %19 = vector.broadcast %cst_14 : f32 to vector<16x1xf32>
    %20 = arith.divf %18, %19 : vector<16x1xf32>
    %21 = vector.broadcast %13 : vector<16x1xf32> to vector<16x32xf32>
    %22 = arith.subf %1, %21 : vector<16x32xf32>
    %cst_15 = arith.constant 9.99999974E-6 : f32
    %23 = vector.broadcast %cst_15 : f32 to vector<16x1xf32>
    %24 = arith.addf %20, %23 : vector<16x1xf32>
    %25 = math.rsqrt %24 : vector<16x1xf32>
    %26 = vector.broadcast %25 : vector<16x1xf32> to vector<16x32xf32>
    %27 = arith.mulf %22, %26 : vector<16x32xf32>
    %28 = vector.broadcast %8 : vector<1x32xf32> to vector<16x32xf32>
    %29 = arith.mulf %27, %28 : vector<16x32xf32>
    %30 = vector.broadcast %9 : vector<1x32xf32> to vector<16x32xf32>
    %31 = arith.addf %29, %30 : vector<16x32xf32>
    %c0_16 = arith.constant 0 : index
    %c0_17 = arith.constant 0 : index
    %32 = vector.load %arg4[%c0_16, %c0_17] : memref<320x128xf32, #tpu.memory_space<vmem>>, vector<32x64xf32>
    %cst_18 = arith.constant dense<0.000000e+00> : vector<16x64xf32>
    %33 = tpu.matmul %31, %32, %cst_18 {dimension_numbers = #tpu.dot_dimension_numbers<[1], [0], [0], [1], [0, 0, 1, 1], [], []>} : vector<16x32xf32>, vector<32x64xf32>, vector<16x64xf32> -> vector<16x64xf32>
    %c2 = arith.constant 2 : index
    %c0_19 = arith.constant 0 : index
    %34 = vector.load %arg3[%c2, %c0_19] : memref<24x128xf32, #tpu.memory_space<vmem>>, vector<1x64xf32>
    %35 = vector.broadcast %34 : vector<1x64xf32> to vector<16x64xf32>
    %36 = arith.addf %33, %35 : vector<16x64xf32>
    %37 = arith.negf %36 : vector<16x64xf32>
    %38 = math.exp %37 : vector<16x64xf32>
    %cst_20 = arith.constant 1.000000e+00 : f32
    %39 = vector.broadcast %cst_20 : f32 to vector<16x64xf32>
    %40 = arith.addf %39, %38 : vector<16x64xf32>
    %41 = arith.divf %39, %40 : vector<16x64xf32>
    %42 = arith.mulf %36, %41 : vector<16x64xf32>
    %c32 = arith.constant 32 : index
    %c0_21 = arith.constant 0 : index
    %43 = vector.load %arg4[%c32, %c0_21] : memref<320x128xf32, #tpu.memory_space<vmem>>, vector<64x32xf32>
    %cst_22 = arith.constant dense<0.000000e+00> : vector<16x32xf32>
    %44 = tpu.matmul %42, %43, %cst_22 {dimension_numbers = #tpu.dot_dimension_numbers<[1], [0], [0], [1], [0, 0, 1, 1], [], []>} : vector<16x64xf32>, vector<64x32xf32>, vector<16x32xf32> -> vector<16x32xf32>
    %c3 = arith.constant 3 : index
    %c0_23 = arith.constant 0 : index
    %45 = vector.load %arg3[%c3, %c0_23] : memref<24x128xf32, #tpu.memory_space<vmem>>, vector<1x32xf32>
    %46 = vector.broadcast %45 : vector<1x32xf32> to vector<16x32xf32>
    %47 = arith.addf %44, %46 : vector<16x32xf32>
    %cst_24 = arith.constant 5.000000e-01 : f32
    %48 = vector.broadcast %cst_24 : f32 to vector<16x32xf32>
    %49 = arith.mulf %48, %47 : vector<16x32xf32>
    %50 = arith.addf %1, %49 : vector<16x32xf32>
    %c4 = arith.constant 4 : index
    %c0_25 = arith.constant 0 : index
    %51 = vector.load %arg3[%c4, %c0_25] : memref<24x128xf32, #tpu.memory_space<vmem>>, vector<1x32xf32>
    %c5 = arith.constant 5 : index
    %c0_26 = arith.constant 0 : index
    %52 = vector.load %arg3[%c5, %c0_26] : memref<24x128xf32, #tpu.memory_space<vmem>>, vector<1x32xf32>
    %cst_27 = arith.constant dense<0.000000e+00> : vector<16xf32>
    %53 = vector.multi_reduction <add>, %50, %cst_27 [1] : vector<16x32xf32> to vector<16xf32>
    %54 = vector.shape_cast %53 : vector<16xf32> to vector<16x1xf32>
    %cst_28 = arith.constant 3.200000e+01 : f32
    %55 = vector.broadcast %cst_28 : f32 to vector<16x1xf32>
    %56 = arith.divf %54, %55 : vector<16x1xf32>
    %57 = vector.broadcast %56 : vector<16x1xf32> to vector<16x32xf32>
    %58 = arith.subf %50, %57 : vector<16x32xf32>
    %59 = arith.mulf %58, %58 : vector<16x32xf32>
    %cst_29 = arith.constant dense<0.000000e+00> : vector<16xf32>
    %60 = vector.multi_reduction <add>, %59, %cst_29 [1] : vector<16x32xf32> to vector<16xf32>
    %61 = vector.shape_cast %60 : vector<16xf32> to vector<16x1xf32>
    %cst_30 = arith.constant 3.200000e+01 : f32
    %62 = vector.broadcast %cst_30 : f32 to vector<16x1xf32>
    %63 = arith.divf %61, %62 : vector<16x1xf32>
    %64 = vector.broadcast %56 : vector<16x1xf32> to vector<16x32xf32>
    %65 = arith.subf %50, %64 : vector<16x32xf32>
    %cst_31 = arith.constant 9.99999974E-6 : f32
    %66 = vector.broadcast %cst_31 : f32 to vector<16x1xf32>
    %67 = arith.addf %63, %66 : vector<16x1xf32>
    %68 = math.rsqrt %67 : vector<16x1xf32>
    %69 = vector.broadcast %68 : vector<16x1xf32> to vector<16x32xf32>
    %70 = arith.mulf %65, %69 : vector<16x32xf32>
    %71 = vector.broadcast %51 : vector<1x32xf32> to vector<16x32xf32>
    %72 = arith.mulf %70, %71 : vector<16x32xf32>
    %73 = vector.broadcast %52 : vector<1x32xf32> to vector<16x32xf32>
    %74 = arith.addf %72, %73 : vector<16x32xf32>
    %c96 = arith.constant 96 : index
    %c0_32 = arith.constant 0 : index
    %75 = vector.load %arg4[%c96, %c0_32] : memref<320x128xf32, #tpu.memory_space<vmem>>, vector<32x96xf32>
    %cst_33 = arith.constant dense<0.000000e+00> : vector<16x96xf32>
    %76 = tpu.matmul %74, %75, %cst_33 {dimension_numbers = #tpu.dot_dimension_numbers<[1], [0], [0], [1], [0, 0, 1, 1], [], []>} : vector<16x32xf32>, vector<32x96xf32>, vector<16x96xf32> -> vector<16x96xf32>
    %c6 = arith.constant 6 : index
    %c0_34 = arith.constant 0 : index
    %77 = vector.load %arg3[%c6, %c0_34] : memref<24x128xf32, #tpu.memory_space<vmem>>, vector<1x96xf32>
    %78 = vector.broadcast %77 : vector<1x96xf32> to vector<16x96xf32>
    %79 = arith.addf %76, %78 : vector<16x96xf32>
    %80 = vector.extract_strided_slice %79 {offsets = [0, 0], sizes = [16, 32], strides = [1, 1]} : vector<16x96xf32> to vector<16x32xf32>
    %81 = vector.extract_strided_slice %79 {offsets = [0, 32], sizes = [16, 32], strides = [1, 1]} : vector<16x96xf32> to vector<16x32xf32>
    %82 = vector.extract_strided_slice %79 {offsets = [0, 64], sizes = [16, 32], strides = [1, 1]} : vector<16x96xf32> to vector<16x32xf32>
    %83 = vector.extract_strided_slice %80 {offsets = [0, 0], sizes = [16, 8], strides = [1, 1]} : vector<16x32xf32> to vector<16x8xf32>
    %84 = vector.shape_cast %83 : vector<16x8xf32> to vector<2x8x8xf32>
    %85 = vector.extract_strided_slice %81 {offsets = [0, 0], sizes = [16, 8], strides = [1, 1]} : vector<16x32xf32> to vector<16x8xf32>
    %86 = vector.shape_cast %85 : vector<16x8xf32> to vector<2x8x8xf32>
    %87 = vector.extract_strided_slice %82 {offsets = [0, 0], sizes = [16, 8], strides = [1, 1]} : vector<16x32xf32> to vector<16x8xf32>
    %88 = vector.shape_cast %87 : vector<16x8xf32> to vector<2x8x8xf32>
    "tpu.trace_start"() <{level = 10 : i32, message = "btd,bsd->bts"}> : () -> ()
    %cst_35 = arith.constant dense<0.000000e+00> : vector<2x8x8xf32>
    %89 = tpu.matmul %84, %86, %cst_35 {dimension_numbers = #tpu.dot_dimension_numbers<[2], [2], [1], [1], [0, 0, 0, 1, 1, 1], [0], [0]>} : vector<2x8x8xf32>, vector<2x8x8xf32>, vector<2x8x8xf32> -> vector<2x8x8xf32>
    "tpu.trace_stop"() : () -> ()
    %cst_36 = arith.constant 0.353553385 : f32
    %90 = vector.broadcast %cst_36 : f32 to vector<2x8x8xf32>
    %91 = arith.mulf %89, %90 : vector<2x8x8xf32>
    %cst_37 = arith.constant -1.000000e+30 : f32
    %92 = vector.shape_cast %4 : vector<2x1x8xi1> to vector<2x1x8xi1>
    %93 = vector.broadcast %92 : vector<2x1x8xi1> to vector<2x8x8xi1>
    %94 = vector.broadcast %cst_37 : f32 to vector<2x8x8xf32>
    %95 = arith.select %93, %91, %94 : vector<2x8x8xi1>, vector<2x8x8xf32>
    %cst_38 = arith.constant dense<0xFF800000> : vector<2x8xf32>
    %96 = vector.multi_reduction <maximumf>, %95, %cst_38 [2] : vector<2x8x8xf32> to vector<2x8xf32>
    %97 = vector.shape_cast %96 : vector<2x8xf32> to vector<2x8x1xf32>
    %98 = vector.broadcast %97 : vector<2x8x1xf32> to vector<2x8x8xf32>
    %99 = arith.subf %95, %98 : vector<2x8x8xf32>
    %100 = math.exp %99 : vector<2x8x8xf32>
    %cst_39 = arith.constant 0.000000e+00 : f32
    %101 = vector.shape_cast %4 : vector<2x1x8xi1> to vector<2x1x8xi1>
    %102 = vector.broadcast %101 : vector<2x1x8xi1> to vector<2x8x8xi1>
    %103 = vector.broadcast %cst_39 : f32 to vector<2x8x8xf32>
    %104 = arith.select %102, %100, %103 : vector<2x8x8xi1>, vector<2x8x8xf32>
    %cst_40 = arith.constant dense<0.000000e+00> : vector<2x8xf32>
    %105 = vector.multi_reduction <add>, %104, %cst_40 [2] : vector<2x8x8xf32> to vector<2x8xf32>
    %106 = vector.shape_cast %105 : vector<2x8xf32> to vector<2x8x1xf32>
    %107 = tpu.reciprocal %106 {approx = true} : vector<2x8x1xf32> -> vector<2x8x1xf32>
    %108 = vector.broadcast %107 : vector<2x8x1xf32> to vector<2x8x8xf32>
    %109 = arith.mulf %104, %108 : vector<2x8x8xf32>
    %cst_41 = arith.constant 0.000000e+00 : f32
    %110 = vector.shape_cast %4 : vector<2x1x8xi1> to vector<2x1x8xi1>
    %111 = vector.broadcast %110 : vector<2x1x8xi1> to vector<2x8x8xi1>
    %112 = vector.broadcast %cst_41 : f32 to vector<2x8x8xf32>
    %113 = arith.select %111, %109, %112 : vector<2x8x8xi1>, vector<2x8x8xf32>
    "tpu.trace_start"() <{level = 10 : i32, message = "bts,bsd->btd"}> : () -> ()
    %cst_42 = arith.constant dense<0.000000e+00> : vector<2x8x8xf32>
    %114 = tpu.matmul %113, %88, %cst_42 {dimension_numbers = #tpu.dot_dimension_numbers<[2], [1], [1], [2], [0, 0, 0, 1, 1, 2], [0], [0]>} : vector<2x8x8xf32>, vector<2x8x8xf32>, vector<2x8x8xf32> -> vector<2x8x8xf32>
    "tpu.trace_stop"() : () -> ()
    %115 = vector.shape_cast %114 : vector<2x8x8xf32> to vector<16x8xf32>
    %116 = vector.extract_strided_slice %80 {offsets = [0, 8], sizes = [16, 8], strides = [1, 1]} : vector<16x32xf32> to vector<16x8xf32>
    %117 = vector.shape_cast %116 : vector<16x8xf32> to vector<2x8x8xf32>
    %118 = vector.extract_strided_slice %81 {offsets = [0, 8], sizes = [16, 8], strides = [1, 1]} : vector<16x32xf32> to vector<16x8xf32>
    %119 = vector.shape_cast %118 : vector<16x8xf32> to vector<2x8x8xf32>
    %120 = vector.extract_strided_slice %82 {offsets = [0, 8], sizes = [16, 8], strides = [1, 1]} : vector<16x32xf32> to vector<16x8xf32>
    %121 = vector.shape_cast %120 : vector<16x8xf32> to vector<2x8x8xf32>
    "tpu.trace_start"() <{level = 10 : i32, message = "btd,bsd->bts"}> : () -> ()
    %cst_43 = arith.constant dense<0.000000e+00> : vector<2x8x8xf32>
    %122 = tpu.matmul %117, %119, %cst_43 {dimension_numbers = #tpu.dot_dimension_numbers<[2], [2], [1], [1], [0, 0, 0, 1, 1, 1], [0], [0]>} : vector<2x8x8xf32>, vector<2x8x8xf32>, vector<2x8x8xf32> -> vector<2x8x8xf32>
    "tpu.trace_stop"() : () -> ()
    %cst_44 = arith.constant 0.353553385 : f32
    %123 = vector.broadcast %cst_44 : f32 to vector<2x8x8xf32>
    %124 = arith.mulf %122, %123 : vector<2x8x8xf32>
    %cst_45 = arith.constant -1.000000e+30 : f32
    %125 = vector.shape_cast %4 : vector<2x1x8xi1> to vector<2x1x8xi1>
    %126 = vector.broadcast %125 : vector<2x1x8xi1> to vector<2x8x8xi1>
    %127 = vector.broadcast %cst_45 : f32 to vector<2x8x8xf32>
    %128 = arith.select %126, %124, %127 : vector<2x8x8xi1>, vector<2x8x8xf32>
    %cst_46 = arith.constant dense<0xFF800000> : vector<2x8xf32>
    %129 = vector.multi_reduction <maximumf>, %128, %cst_46 [2] : vector<2x8x8xf32> to vector<2x8xf32>
    %130 = vector.shape_cast %129 : vector<2x8xf32> to vector<2x8x1xf32>
    %131 = vector.broadcast %130 : vector<2x8x1xf32> to vector<2x8x8xf32>
    %132 = arith.subf %128, %131 : vector<2x8x8xf32>
    %133 = math.exp %132 : vector<2x8x8xf32>
    %cst_47 = arith.constant 0.000000e+00 : f32
    %134 = vector.shape_cast %4 : vector<2x1x8xi1> to vector<2x1x8xi1>
    %135 = vector.broadcast %134 : vector<2x1x8xi1> to vector<2x8x8xi1>
    %136 = vector.broadcast %cst_47 : f32 to vector<2x8x8xf32>
    %137 = arith.select %135, %133, %136 : vector<2x8x8xi1>, vector<2x8x8xf32>
    %cst_48 = arith.constant dense<0.000000e+00> : vector<2x8xf32>
    %138 = vector.multi_reduction <add>, %137, %cst_48 [2] : vector<2x8x8xf32> to vector<2x8xf32>
    %139 = vector.shape_cast %138 : vector<2x8xf32> to vector<2x8x1xf32>
    %140 = tpu.reciprocal %139 {approx = true} : vector<2x8x1xf32> -> vector<2x8x1xf32>
    %141 = vector.broadcast %140 : vector<2x8x1xf32> to vector<2x8x8xf32>
    %142 = arith.mulf %137, %141 : vector<2x8x8xf32>
    %cst_49 = arith.constant 0.000000e+00 : f32
    %143 = vector.shape_cast %4 : vector<2x1x8xi1> to vector<2x1x8xi1>
    %144 = vector.broadcast %143 : vector<2x1x8xi1> to vector<2x8x8xi1>
    %145 = vector.broadcast %cst_49 : f32 to vector<2x8x8xf32>
    %146 = arith.select %144, %142, %145 : vector<2x8x8xi1>, vector<2x8x8xf32>
    "tpu.trace_start"() <{level = 10 : i32, message = "bts,bsd->btd"}> : () -> ()
    %cst_50 = arith.constant dense<0.000000e+00> : vector<2x8x8xf32>
    %147 = tpu.matmul %146, %121, %cst_50 {dimension_numbers = #tpu.dot_dimension_numbers<[2], [1], [1], [2], [0, 0, 0, 1, 1, 2], [0], [0]>} : vector<2x8x8xf32>, vector<2x8x8xf32>, vector<2x8x8xf32> -> vector<2x8x8xf32>
    "tpu.trace_stop"() : () -> ()
    %148 = vector.shape_cast %147 : vector<2x8x8xf32> to vector<16x8xf32>
    %149 = vector.extract_strided_slice %80 {offsets = [0, 16], sizes = [16, 8], strides = [1, 1]} : vector<16x32xf32> to vector<16x8xf32>
    %150 = vector.shape_cast %149 : vector<16x8xf32> to vector<2x8x8xf32>
    %151 = vector.extract_strided_slice %81 {offsets = [0, 16], sizes = [16, 8], strides = [1, 1]} : vector<16x32xf32> to vector<16x8xf32>
    %152 = vector.shape_cast %151 : vector<16x8xf32> to vector<2x8x8xf32>
    %153 = vector.extract_strided_slice %82 {offsets = [0, 16], sizes = [16, 8], strides = [1, 1]} : vector<16x32xf32> to vector<16x8xf32>
    %154 = vector.shape_cast %153 : vector<16x8xf32> to vector<2x8x8xf32>
    "tpu.trace_start"() <{level = 10 : i32, message = "btd,bsd->bts"}> : () -> ()
    %cst_51 = arith.constant dense<0.000000e+00> : vector<2x8x8xf32>
    %155 = tpu.matmul %150, %152, %cst_51 {dimension_numbers = #tpu.dot_dimension_numbers<[2], [2], [1], [1], [0, 0, 0, 1, 1, 1], [0], [0]>} : vector<2x8x8xf32>, vector<2x8x8xf32>, vector<2x8x8xf32> -> vector<2x8x8xf32>
    "tpu.trace_stop"() : () -> ()
    %cst_52 = arith.constant 0.353553385 : f32
    %156 = vector.broadcast %cst_52 : f32 to vector<2x8x8xf32>
    %157 = arith.mulf %155, %156 : vector<2x8x8xf32>
    %cst_53 = arith.constant -1.000000e+30 : f32
    %158 = vector.shape_cast %4 : vector<2x1x8xi1> to vector<2x1x8xi1>
    %159 = vector.broadcast %158 : vector<2x1x8xi1> to vector<2x8x8xi1>
    %160 = vector.broadcast %cst_53 : f32 to vector<2x8x8xf32>
    %161 = arith.select %159, %157, %160 : vector<2x8x8xi1>, vector<2x8x8xf32>
    %cst_54 = arith.constant dense<0xFF800000> : vector<2x8xf32>
    %162 = vector.multi_reduction <maximumf>, %161, %cst_54 [2] : vector<2x8x8xf32> to vector<2x8xf32>
    %163 = vector.shape_cast %162 : vector<2x8xf32> to vector<2x8x1xf32>
    %164 = vector.broadcast %163 : vector<2x8x1xf32> to vector<2x8x8xf32>
    %165 = arith.subf %161, %164 : vector<2x8x8xf32>
    %166 = math.exp %165 : vector<2x8x8xf32>
    %cst_55 = arith.constant 0.000000e+00 : f32
    %167 = vector.shape_cast %4 : vector<2x1x8xi1> to vector<2x1x8xi1>
    %168 = vector.broadcast %167 : vector<2x1x8xi1> to vector<2x8x8xi1>
    %169 = vector.broadcast %cst_55 : f32 to vector<2x8x8xf32>
    %170 = arith.select %168, %166, %169 : vector<2x8x8xi1>, vector<2x8x8xf32>
    %cst_56 = arith.constant dense<0.000000e+00> : vector<2x8xf32>
    %171 = vector.multi_reduction <add>, %170, %cst_56 [2] : vector<2x8x8xf32> to vector<2x8xf32>
    %172 = vector.shape_cast %171 : vector<2x8xf32> to vector<2x8x1xf32>
    %173 = tpu.reciprocal %172 {approx = true} : vector<2x8x1xf32> -> vector<2x8x1xf32>
    %174 = vector.broadcast %173 : vector<2x8x1xf32> to vector<2x8x8xf32>
    %175 = arith.mulf %170, %174 : vector<2x8x8xf32>
    %cst_57 = arith.constant 0.000000e+00 : f32
    %176 = vector.shape_cast %4 : vector<2x1x8xi1> to vector<2x1x8xi1>
    %177 = vector.broadcast %176 : vector<2x1x8xi1> to vector<2x8x8xi1>
    %178 = vector.broadcast %cst_57 : f32 to vector<2x8x8xf32>
    %179 = arith.select %177, %175, %178 : vector<2x8x8xi1>, vector<2x8x8xf32>
    "tpu.trace_start"() <{level = 10 : i32, message = "bts,bsd->btd"}> : () -> ()
    %cst_58 = arith.constant dense<0.000000e+00> : vector<2x8x8xf32>
    %180 = tpu.matmul %179, %154, %cst_58 {dimension_numbers = #tpu.dot_dimension_numbers<[2], [1], [1], [2], [0, 0, 0, 1, 1, 2], [0], [0]>} : vector<2x8x8xf32>, vector<2x8x8xf32>, vector<2x8x8xf32> -> vector<2x8x8xf32>
    "tpu.trace_stop"() : () -> ()
    %181 = vector.shape_cast %180 : vector<2x8x8xf32> to vector<16x8xf32>
    %182 = vector.extract_strided_slice %80 {offsets = [0, 24], sizes = [16, 8], strides = [1, 1]} : vector<16x32xf32> to vector<16x8xf32>
    %183 = vector.shape_cast %182 : vector<16x8xf32> to vector<2x8x8xf32>
    %184 = vector.extract_strided_slice %81 {offsets = [0, 24], sizes = [16, 8], strides = [1, 1]} : vector<16x32xf32> to vector<16x8xf32>
    %185 = vector.shape_cast %184 : vector<16x8xf32> to vector<2x8x8xf32>
    %186 = vector.extract_strided_slice %82 {offsets = [0, 24], sizes = [16, 8], strides = [1, 1]} : vector<16x32xf32> to vector<16x8xf32>
    %187 = vector.shape_cast %186 : vector<16x8xf32> to vector<2x8x8xf32>
    "tpu.trace_start"() <{level = 10 : i32, message = "btd,bsd->bts"}> : () -> ()
    %cst_59 = arith.constant dense<0.000000e+00> : vector<2x8x8xf32>
    %188 = tpu.matmul %183, %185, %cst_59 {dimension_numbers = #tpu.dot_dimension_numbers<[2], [2], [1], [1], [0, 0, 0, 1, 1, 1], [0], [0]>} : vector<2x8x8xf32>, vector<2x8x8xf32>, vector<2x8x8xf32> -> vector<2x8x8xf32>
    "tpu.trace_stop"() : () -> ()
    %cst_60 = arith.constant 0.353553385 : f32
    %189 = vector.broadcast %cst_60 : f32 to vector<2x8x8xf32>
    %190 = arith.mulf %188, %189 : vector<2x8x8xf32>
    %cst_61 = arith.constant -1.000000e+30 : f32
    %191 = vector.shape_cast %4 : vector<2x1x8xi1> to vector<2x1x8xi1>
    %192 = vector.broadcast %191 : vector<2x1x8xi1> to vector<2x8x8xi1>
    %193 = vector.broadcast %cst_61 : f32 to vector<2x8x8xf32>
    %194 = arith.select %192, %190, %193 : vector<2x8x8xi1>, vector<2x8x8xf32>
    %cst_62 = arith.constant dense<0xFF800000> : vector<2x8xf32>
    %195 = vector.multi_reduction <maximumf>, %194, %cst_62 [2] : vector<2x8x8xf32> to vector<2x8xf32>
    %196 = vector.shape_cast %195 : vector<2x8xf32> to vector<2x8x1xf32>
    %197 = vector.broadcast %196 : vector<2x8x1xf32> to vector<2x8x8xf32>
    %198 = arith.subf %194, %197 : vector<2x8x8xf32>
    %199 = math.exp %198 : vector<2x8x8xf32>
    %cst_63 = arith.constant 0.000000e+00 : f32
    %200 = vector.shape_cast %4 : vector<2x1x8xi1> to vector<2x1x8xi1>
    %201 = vector.broadcast %200 : vector<2x1x8xi1> to vector<2x8x8xi1>
    %202 = vector.broadcast %cst_63 : f32 to vector<2x8x8xf32>
    %203 = arith.select %201, %199, %202 : vector<2x8x8xi1>, vector<2x8x8xf32>
    %cst_64 = arith.constant dense<0.000000e+00> : vector<2x8xf32>
    %204 = vector.multi_reduction <add>, %203, %cst_64 [2] : vector<2x8x8xf32> to vector<2x8xf32>
    %205 = vector.shape_cast %204 : vector<2x8xf32> to vector<2x8x1xf32>
    %206 = tpu.reciprocal %205 {approx = true} : vector<2x8x1xf32> -> vector<2x8x1xf32>
    %207 = vector.broadcast %206 : vector<2x8x1xf32> to vector<2x8x8xf32>
    %208 = arith.mulf %203, %207 : vector<2x8x8xf32>
    %cst_65 = arith.constant 0.000000e+00 : f32
    %209 = vector.shape_cast %4 : vector<2x1x8xi1> to vector<2x1x8xi1>
    %210 = vector.broadcast %209 : vector<2x1x8xi1> to vector<2x8x8xi1>
    %211 = vector.broadcast %cst_65 : f32 to vector<2x8x8xf32>
    %212 = arith.select %210, %208, %211 : vector<2x8x8xi1>, vector<2x8x8xf32>
    "tpu.trace_start"() <{level = 10 : i32, message = "bts,bsd->btd"}> : () -> ()
    %cst_66 = arith.constant dense<0.000000e+00> : vector<2x8x8xf32>
    %213 = tpu.matmul %212, %187, %cst_66 {dimension_numbers = #tpu.dot_dimension_numbers<[2], [1], [1], [2], [0, 0, 0, 1, 1, 2], [0], [0]>} : vector<2x8x8xf32>, vector<2x8x8xf32>, vector<2x8x8xf32> -> vector<2x8x8xf32>
    "tpu.trace_stop"() : () -> ()
    %214 = vector.shape_cast %213 : vector<2x8x8xf32> to vector<16x8xf32>
    %215 = tpu.concatenate %115, %148, %181, %214 in 1 : vector<16x8xf32>, vector<16x8xf32>, vector<16x8xf32>, vector<16x8xf32> -> vector<16x32xf32>
    %c128 = arith.constant 128 : index
    %c0_67 = arith.constant 0 : index
    %216 = vector.load %arg4[%c128, %c0_67] : memref<320x128xf32, #tpu.memory_space<vmem>>, vector<32x32xf32>
    %cst_68 = arith.constant dense<0.000000e+00> : vector<16x32xf32>
    %217 = tpu.matmul %215, %216, %cst_68 {dimension_numbers = #tpu.dot_dimension_numbers<[1], [0], [0], [1], [0, 0, 1, 1], [], []>} : vector<16x32xf32>, vector<32x32xf32>, vector<16x32xf32> -> vector<16x32xf32>
    %c7 = arith.constant 7 : index
    %c0_69 = arith.constant 0 : index
    %218 = vector.load %arg3[%c7, %c0_69] : memref<24x128xf32, #tpu.memory_space<vmem>>, vector<1x32xf32>
    %219 = vector.broadcast %218 : vector<1x32xf32> to vector<16x32xf32>
    %220 = arith.addf %217, %219 : vector<16x32xf32>
    %221 = arith.addf %50, %220 : vector<16x32xf32>
    %222 = tpu.concatenate %81, %82 in 1 : vector<16x32xf32>, vector<16x32xf32> -> vector<16x64xf32>
    %223 = vector.shape_cast %222 : vector<16x64xf32> to vector<2x8x64xf32>
    %c0_70 = arith.constant 0 : index
    %c0_71 = arith.constant 0 : index
    %c0_72 = arith.constant 0 : index
    %224 = vector.load %arg6[%c0_70, %c0_71, %c0_72] : memref<2x8x64xf32, #tpu.memory_space<vmem>>, vector<2x8x64xf32>
    tpu.vector_store %arg6[%c0_70, %c0_71, %c0_72], %223 {strides = array<i32>} : memref<2x8x64xf32, #tpu.memory_space<vmem>>, vector<2x8x64xf32>,
    %c8 = arith.constant 8 : index
    %c0_73 = arith.constant 0 : index
    %225 = vector.load %arg3[%c8, %c0_73] : memref<24x128xf32, #tpu.memory_space<vmem>>, vector<1x32xf32>
    %c9 = arith.constant 9 : index
    %c0_74 = arith.constant 0 : index
    %226 = vector.load %arg3[%c9, %c0_74] : memref<24x128xf32, #tpu.memory_space<vmem>>, vector<1x32xf32>
    %cst_75 = arith.constant dense<0.000000e+00> : vector<16xf32>
    %227 = vector.multi_reduction <add>, %221, %cst_75 [1] : vector<16x32xf32> to vector<16xf32>
    %228 = vector.shape_cast %227 : vector<16xf32> to vector<16x1xf32>
    %cst_76 = arith.constant 3.200000e+01 : f32
    %229 = vector.broadcast %cst_76 : f32 to vector<16x1xf32>
    %230 = arith.divf %228, %229 : vector<16x1xf32>
    %231 = vector.broadcast %230 : vector<16x1xf32> to vector<16x32xf32>
    %232 = arith.subf %221, %231 : vector<16x32xf32>
    %233 = arith.mulf %232, %232 : vector<16x32xf32>
    %cst_77 = arith.constant dense<0.000000e+00> : vector<16xf32>
    %234 = vector.multi_reduction <add>, %233, %cst_77 [1] : vector<16x32xf32> to vector<16xf32>
    %235 = vector.shape_cast %234 : vector<16xf32> to vector<16x1xf32>
    %cst_78 = arith.constant 3.200000e+01 : f32
    %236 = vector.broadcast %cst_78 : f32 to vector<16x1xf32>
    %237 = arith.divf %235, %236 : vector<16x1xf32>
    %238 = vector.broadcast %230 : vector<16x1xf32> to vector<16x32xf32>
    %239 = arith.subf %221, %238 : vector<16x32xf32>
    %cst_79 = arith.constant 9.99999974E-6 : f32
    %240 = vector.broadcast %cst_79 : f32 to vector<16x1xf32>
    %241 = arith.addf %237, %240 : vector<16x1xf32>
    %242 = math.rsqrt %241 : vector<16x1xf32>
    %243 = vector.broadcast %242 : vector<16x1xf32> to vector<16x32xf32>
    %244 = arith.mulf %239, %243 : vector<16x32xf32>
    %245 = vector.broadcast %225 : vector<1x32xf32> to vector<16x32xf32>
    %246 = arith.mulf %244, %245 : vector<16x32xf32>
    %247 = vector.broadcast %226 : vector<1x32xf32> to vector<16x32xf32>
    %248 = arith.addf %246, %247 : vector<16x32xf32>
    %cst_80 = arith.constant 0.000000e+00 : f32
    %249 = vector.shape_cast %7 : vector<16x1xi1> to vector<16x1xi1>
    %250 = vector.broadcast %249 : vector<16x1xi1> to vector<16x32xi1>
    %251 = vector.broadcast %cst_80 : f32 to vector<16x32xf32>
    %252 = arith.select %250, %248, %251 : vector<16x32xi1>, vector<16x32xf32>
    %c160 = arith.constant 160 : index
    %c0_81 = arith.constant 0 : index
    %253 = vector.load %arg4[%c160, %c0_81] : memref<320x128xf32, #tpu.memory_space<vmem>>, vector<32x64xf32>
    %cst_82 = arith.constant dense<0.000000e+00> : vector<16x64xf32>
    %254 = tpu.matmul %252, %253, %cst_82 {dimension_numbers = #tpu.dot_dimension_numbers<[1], [0], [0], [1], [0, 0, 1, 1], [], []>} : vector<16x32xf32>, vector<32x64xf32>, vector<16x64xf32> -> vector<16x64xf32>
    %c10 = arith.constant 10 : index
    %c0_83 = arith.constant 0 : index
    %255 = vector.load %arg3[%c10, %c0_83] : memref<24x128xf32, #tpu.memory_space<vmem>>, vector<1x64xf32>
    %256 = vector.broadcast %255 : vector<1x64xf32> to vector<16x64xf32>
    %257 = arith.addf %254, %256 : vector<16x64xf32>
    %258 = vector.extract_strided_slice %257 {offsets = [0, 0], sizes = [16, 32], strides = [1, 1]} : vector<16x64xf32> to vector<16x32xf32>
    %259 = vector.extract_strided_slice %257 {offsets = [0, 32], sizes = [16, 32], strides = [1, 1]} : vector<16x64xf32> to vector<16x32xf32>
    %260 = arith.negf %259 : vector<16x32xf32>
    %261 = math.exp %260 : vector<16x32xf32>
    %cst_84 = arith.constant 1.000000e+00 : f32
    %262 = vector.broadcast %cst_84 : f32 to vector<16x32xf32>
    %263 = arith.addf %262, %261 : vector<16x32xf32>
    %264 = arith.divf %262, %263 : vector<16x32xf32>
    %265 = arith.mulf %258, %264 : vector<16x32xf32>
    %266 = vector.shape_cast %265 : vector<16x32xf32> to vector<2x8x32xf32>
    %cst_85 = arith.constant 0.000000e+00 : f32
    %267 = vector.broadcast %cst_85 : f32 to vector<2x1x32xf32>
    %268 = vector.extract_strided_slice %266 {offsets = [0, 0, 0], sizes = [2, 7, 32], strides = [1, 1, 1]} : vector<2x8x32xf32> to vector<2x7x32xf32>
    %269 = tpu.concatenate %267, %268 in 1 : vector<2x1x32xf32>, vector<2x7x32xf32> -> vector<2x8x32xf32>
    %270 = vector.extract_strided_slice %266 {offsets = [0, 1, 0], sizes = [2, 7, 32], strides = [1, 1, 1]} : vector<2x8x32xf32> to vector<2x7x32xf32>
    %271 = tpu.concatenate %270, %267 in 1 : vector<2x7x32xf32>, vector<2x1x32xf32> -> vector<2x8x32xf32>
    %c21 = arith.constant 21 : index
    %c0_86 = arith.constant 0 : index
    %272 = vector.load %arg3[%c21, %c0_86] : memref<24x128xf32, #tpu.memory_space<vmem>>, vector<1x32xf32>
    %273 = vector.shape_cast %272 : vector<1x32xf32> to vector<1x1x32xf32>
    %274 = vector.broadcast %273 : vector<1x1x32xf32> to vector<2x8x32xf32>
    %275 = arith.mulf %269, %274 : vector<2x8x32xf32>
    %c22 = arith.constant 22 : index
    %c0_87 = arith.constant 0 : index
    %276 = vector.load %arg3[%c22, %c0_87] : memref<24x128xf32, #tpu.memory_space<vmem>>, vector<1x32xf32>
    %277 = vector.shape_cast %276 : vector<1x32xf32> to vector<1x1x32xf32>
    %278 = vector.broadcast %277 : vector<1x1x32xf32> to vector<2x8x32xf32>
    %279 = arith.mulf %266, %278 : vector<2x8x32xf32>
    %280 = arith.addf %275, %279 : vector<2x8x32xf32>
    %c23 = arith.constant 23 : index
    %c0_88 = arith.constant 0 : index
    %281 = vector.load %arg3[%c23, %c0_88] : memref<24x128xf32, #tpu.memory_space<vmem>>, vector<1x32xf32>
    %282 = vector.shape_cast %281 : vector<1x32xf32> to vector<1x1x32xf32>
    %283 = vector.broadcast %282 : vector<1x1x32xf32> to vector<2x8x32xf32>
    %284 = arith.mulf %271, %283 : vector<2x8x32xf32>
    %285 = arith.addf %280, %284 : vector<2x8x32xf32>
    %c11 = arith.constant 11 : index
    %c0_89 = arith.constant 0 : index
    %286 = vector.load %arg3[%c11, %c0_89] : memref<24x128xf32, #tpu.memory_space<vmem>>, vector<1x32xf32>
    %287 = vector.shape_cast %286 : vector<1x32xf32> to vector<1x1x32xf32>
    %288 = vector.broadcast %287 : vector<1x1x32xf32> to vector<2x8x32xf32>
    %289 = arith.addf %285, %288 : vector<2x8x32xf32>
    %c12 = arith.constant 12 : index
    %c0_90 = arith.constant 0 : index
    %290 = vector.load %arg3[%c12, %c0_90] : memref<24x128xf32, #tpu.memory_space<vmem>>, vector<1x32xf32>
    %c13 = arith.constant 13 : index
    %c0_91 = arith.constant 0 : index
    %291 = vector.load %arg3[%c13, %c0_91] : memref<24x128xf32, #tpu.memory_space<vmem>>, vector<1x32xf32>
    %cst_92 = arith.constant dense<0.000000e+00> : vector<2x8xf32>
    %292 = vector.multi_reduction <add>, %289, %cst_92 [2] : vector<2x8x32xf32> to vector<2x8xf32>
    %293 = vector.shape_cast %292 : vector<2x8xf32> to vector<2x8x1xf32>
    %cst_93 = arith.constant 3.200000e+01 : f32
    %294 = vector.broadcast %cst_93 : f32 to vector<2x8x1xf32>
    %295 = arith.divf %293, %294 : vector<2x8x1xf32>
    %296 = vector.broadcast %295 : vector<2x8x1xf32> to vector<2x8x32xf32>
    %297 = arith.subf %289, %296 : vector<2x8x32xf32>
    %298 = arith.mulf %297, %297 : vector<2x8x32xf32>
    %cst_94 = arith.constant dense<0.000000e+00> : vector<2x8xf32>
    %299 = vector.multi_reduction <add>, %298, %cst_94 [2] : vector<2x8x32xf32> to vector<2x8xf32>
    %300 = vector.shape_cast %299 : vector<2x8xf32> to vector<2x8x1xf32>
    %cst_95 = arith.constant 3.200000e+01 : f32
    %301 = vector.broadcast %cst_95 : f32 to vector<2x8x1xf32>
    %302 = arith.divf %300, %301 : vector<2x8x1xf32>
    %303 = vector.broadcast %295 : vector<2x8x1xf32> to vector<2x8x32xf32>
    %304 = arith.subf %289, %303 : vector<2x8x32xf32>
    %cst_96 = arith.constant 9.99999974E-6 : f32
    %305 = vector.broadcast %cst_96 : f32 to vector<2x8x1xf32>
    %306 = arith.addf %302, %305 : vector<2x8x1xf32>
    %307 = math.rsqrt %306 : vector<2x8x1xf32>
    %308 = vector.broadcast %307 : vector<2x8x1xf32> to vector<2x8x32xf32>
    %309 = arith.mulf %304, %308 : vector<2x8x32xf32>
    %310 = vector.shape_cast %290 : vector<1x32xf32> to vector<1x1x32xf32>
    %311 = vector.broadcast %310 : vector<1x1x32xf32> to vector<2x8x32xf32>
    %312 = arith.mulf %309, %311 : vector<2x8x32xf32>
    %313 = vector.shape_cast %291 : vector<1x32xf32> to vector<1x1x32xf32>
    %314 = vector.broadcast %313 : vector<1x1x32xf32> to vector<2x8x32xf32>
    %315 = arith.addf %312, %314 : vector<2x8x32xf32>
    %316 = arith.negf %315 : vector<2x8x32xf32>
    %317 = math.exp %316 : vector<2x8x32xf32>
    %cst_97 = arith.constant 1.000000e+00 : f32
    %318 = vector.broadcast %cst_97 : f32 to vector<2x8x32xf32>
    %319 = arith.addf %318, %317 : vector<2x8x32xf32>
    %320 = arith.divf %318, %319 : vector<2x8x32xf32>
    %321 = arith.mulf %315, %320 : vector<2x8x32xf32>
    %322 = vector.shape_cast %321 : vector<2x8x32xf32> to vector<16x32xf32>
    %c192 = arith.constant 192 : index
    %c0_98 = arith.constant 0 : index
    %323 = vector.load %arg4[%c192, %c0_98] : memref<320x128xf32, #tpu.memory_space<vmem>>, vector<32x32xf32>
    %cst_99 = arith.constant dense<0.000000e+00> : vector<16x32xf32>
    %324 = tpu.matmul %322, %323, %cst_99 {dimension_numbers = #tpu.dot_dimension_numbers<[1], [0], [0], [1], [0, 0, 1, 1], [], []>} : vector<16x32xf32>, vector<32x32xf32>, vector<16x32xf32> -> vector<16x32xf32>
    %c14 = arith.constant 14 : index
    %c0_100 = arith.constant 0 : index
    %325 = vector.load %arg3[%c14, %c0_100] : memref<24x128xf32, #tpu.memory_space<vmem>>, vector<1x32xf32>
    %326 = vector.broadcast %325 : vector<1x32xf32> to vector<16x32xf32>
    %327 = arith.addf %324, %326 : vector<16x32xf32>
    %cst_101 = arith.constant 0.000000e+00 : f32
    %328 = vector.shape_cast %7 : vector<16x1xi1> to vector<16x1xi1>
    %329 = vector.broadcast %328 : vector<16x1xi1> to vector<16x32xi1>
    %330 = vector.broadcast %cst_101 : f32 to vector<16x32xf32>
    %331 = arith.select %329, %327, %330 : vector<16x32xi1>, vector<16x32xf32>
    %332 = arith.addf %221, %331 : vector<16x32xf32>
    %c15 = arith.constant 15 : index
    %c0_102 = arith.constant 0 : index
    %333 = vector.load %arg3[%c15, %c0_102] : memref<24x128xf32, #tpu.memory_space<vmem>>, vector<1x32xf32>
    %c16 = arith.constant 16 : index
    %c0_103 = arith.constant 0 : index
    %334 = vector.load %arg3[%c16, %c0_103] : memref<24x128xf32, #tpu.memory_space<vmem>>, vector<1x32xf32>
    %cst_104 = arith.constant dense<0.000000e+00> : vector<16xf32>
    %335 = vector.multi_reduction <add>, %332, %cst_104 [1] : vector<16x32xf32> to vector<16xf32>
    %336 = vector.shape_cast %335 : vector<16xf32> to vector<16x1xf32>
    %cst_105 = arith.constant 3.200000e+01 : f32
    %337 = vector.broadcast %cst_105 : f32 to vector<16x1xf32>
    %338 = arith.divf %336, %337 : vector<16x1xf32>
    %339 = vector.broadcast %338 : vector<16x1xf32> to vector<16x32xf32>
    %340 = arith.subf %332, %339 : vector<16x32xf32>
    %341 = arith.mulf %340, %340 : vector<16x32xf32>
    %cst_106 = arith.constant dense<0.000000e+00> : vector<16xf32>
    %342 = vector.multi_reduction <add>, %341, %cst_106 [1] : vector<16x32xf32> to vector<16xf32>
    %343 = vector.shape_cast %342 : vector<16xf32> to vector<16x1xf32>
    %cst_107 = arith.constant 3.200000e+01 : f32
    %344 = vector.broadcast %cst_107 : f32 to vector<16x1xf32>
    %345 = arith.divf %343, %344 : vector<16x1xf32>
    %346 = vector.broadcast %338 : vector<16x1xf32> to vector<16x32xf32>
    %347 = arith.subf %332, %346 : vector<16x32xf32>
    %cst_108 = arith.constant 9.99999974E-6 : f32
    %348 = vector.broadcast %cst_108 : f32 to vector<16x1xf32>
    %349 = arith.addf %345, %348 : vector<16x1xf32>
    %350 = math.rsqrt %349 : vector<16x1xf32>
    %351 = vector.broadcast %350 : vector<16x1xf32> to vector<16x32xf32>
    %352 = arith.mulf %347, %351 : vector<16x32xf32>
    %353 = vector.broadcast %333 : vector<1x32xf32> to vector<16x32xf32>
    %354 = arith.mulf %352, %353 : vector<16x32xf32>
    %355 = vector.broadcast %334 : vector<1x32xf32> to vector<16x32xf32>
    %356 = arith.addf %354, %355 : vector<16x32xf32>
    %c224 = arith.constant 224 : index
    %c0_109 = arith.constant 0 : index
    %357 = vector.load %arg4[%c224, %c0_109] : memref<320x128xf32, #tpu.memory_space<vmem>>, vector<32x64xf32>
    %cst_110 = arith.constant dense<0.000000e+00> : vector<16x64xf32>
    %358 = tpu.matmul %356, %357, %cst_110 {dimension_numbers = #tpu.dot_dimension_numbers<[1], [0], [0], [1], [0, 0, 1, 1], [], []>} : vector<16x32xf32>, vector<32x64xf32>, vector<16x64xf32> -> vector<16x64xf32>
    %c17 = arith.constant 17 : index
    %c0_111 = arith.constant 0 : index
    %359 = vector.load %arg3[%c17, %c0_111] : memref<24x128xf32, #tpu.memory_space<vmem>>, vector<1x64xf32>
    %360 = vector.broadcast %359 : vector<1x64xf32> to vector<16x64xf32>
    %361 = arith.addf %358, %360 : vector<16x64xf32>
    %362 = arith.negf %361 : vector<16x64xf32>
    %363 = math.exp %362 : vector<16x64xf32>
    %cst_112 = arith.constant 1.000000e+00 : f32
    %364 = vector.broadcast %cst_112 : f32 to vector<16x64xf32>
    %365 = arith.addf %364, %363 : vector<16x64xf32>
    %366 = arith.divf %364, %365 : vector<16x64xf32>
    %367 = arith.mulf %361, %366 : vector<16x64xf32>
    %c256 = arith.constant 256 : index
    %c0_113 = arith.constant 0 : index
    %368 = vector.load %arg4[%c256, %c0_113] : memref<320x128xf32, #tpu.memory_space<vmem>>, vector<64x32xf32>
    %cst_114 = arith.constant dense<0.000000e+00> : vector<16x32xf32>
    %369 = tpu.matmul %367, %368, %cst_114 {dimension_numbers = #tpu.dot_dimension_numbers<[1], [0], [0], [1], [0, 0, 1, 1], [], []>} : vector<16x64xf32>, vector<64x32xf32>, vector<16x32xf32> -> vector<16x32xf32>
    %c18 = arith.constant 18 : index
    %c0_115 = arith.constant 0 : index
    %370 = vector.load %arg3[%c18, %c0_115] : memref<24x128xf32, #tpu.memory_space<vmem>>, vector<1x32xf32>
    %371 = vector.broadcast %370 : vector<1x32xf32> to vector<16x32xf32>
    %372 = arith.addf %369, %371 : vector<16x32xf32>
    %cst_116 = arith.constant 5.000000e-01 : f32
    %373 = vector.broadcast %cst_116 : f32 to vector<16x32xf32>
    %374 = arith.mulf %373, %372 : vector<16x32xf32>
    %375 = arith.addf %332, %374 : vector<16x32xf32>
    %c19 = arith.constant 19 : index
    %c0_117 = arith.constant 0 : index
    %376 = vector.load %arg3[%c19, %c0_117] : memref<24x128xf32, #tpu.memory_space<vmem>>, vector<1x32xf32>
    %c20 = arith.constant 20 : index
    %c0_118 = arith.constant 0 : index
    %377 = vector.load %arg3[%c20, %c0_118] : memref<24x128xf32, #tpu.memory_space<vmem>>, vector<1x32xf32>
    %cst_119 = arith.constant dense<0.000000e+00> : vector<16xf32>
    %378 = vector.multi_reduction <add>, %375, %cst_119 [1] : vector<16x32xf32> to vector<16xf32>
    %379 = vector.shape_cast %378 : vector<16xf32> to vector<16x1xf32>
    %cst_120 = arith.constant 3.200000e+01 : f32
    %380 = vector.broadcast %cst_120 : f32 to vector<16x1xf32>
    %381 = arith.divf %379, %380 : vector<16x1xf32>
    %382 = vector.broadcast %381 : vector<16x1xf32> to vector<16x32xf32>
    %383 = arith.subf %375, %382 : vector<16x32xf32>
    %384 = arith.mulf %383, %383 : vector<16x32xf32>
    %cst_121 = arith.constant dense<0.000000e+00> : vector<16xf32>
    %385 = vector.multi_reduction <add>, %384, %cst_121 [1] : vector<16x32xf32> to vector<16xf32>
    %386 = vector.shape_cast %385 : vector<16xf32> to vector<16x1xf32>
    %cst_122 = arith.constant 3.200000e+01 : f32
    %387 = vector.broadcast %cst_122 : f32 to vector<16x1xf32>
    %388 = arith.divf %386, %387 : vector<16x1xf32>
    %389 = vector.broadcast %381 : vector<16x1xf32> to vector<16x32xf32>
    %390 = arith.subf %375, %389 : vector<16x32xf32>
    %cst_123 = arith.constant 9.99999974E-6 : f32
    %391 = vector.broadcast %cst_123 : f32 to vector<16x1xf32>
    %392 = arith.addf %388, %391 : vector<16x1xf32>
    %393 = math.rsqrt %392 : vector<16x1xf32>
    %394 = vector.broadcast %393 : vector<16x1xf32> to vector<16x32xf32>
    %395 = arith.mulf %390, %394 : vector<16x32xf32>
    %396 = vector.broadcast %376 : vector<1x32xf32> to vector<16x32xf32>
    %397 = arith.mulf %395, %396 : vector<16x32xf32>
    %398 = vector.broadcast %377 : vector<1x32xf32> to vector<16x32xf32>
    %399 = arith.addf %397, %398 : vector<16x32xf32>
    %400 = vector.shape_cast %399 : vector<16x32xf32> to vector<2x8x32xf32>
    %c0_124 = arith.constant 0 : index
    %c0_125 = arith.constant 0 : index
    %c0_126 = arith.constant 0 : index
    %401 = vector.load %arg5[%c0_124, %c0_125, %c0_126] : memref<2x8x32xf32, #tpu.memory_space<vmem>>, vector<2x8x32xf32>
    tpu.vector_store %arg5[%c0_124, %c0_125, %c0_126], %400 {strides = array<i32>} : memref<2x8x32xf32, #tpu.memory_space<vmem>>, vector<2x8x32xf32>,
    return
  }
}

</mosaic_0001>

<bundles_post_ra>
// kernel: tpu_custom_call.1
= control target key start
LH: loop header
LB: loop body
LE: loop exit
PB: predicated region body
PF: predicated region fallthrough
CT: control target
= control target key end

     0   :  { %12 = vsyncpa [#allocation3], 0  ;;  %s3547_s0 = inlined_call_operand.vmem [shape: f32[2,8,32], index: 0, kind: input, shape index: {}]   ;;  %s3548_s1 = inlined_call_operand.vmem [shape: f32[2,1,8], index: 1, kind: input, shape index: {}]   ;;  %s3549_s2 = inlined_call_operand.vmem [shape: f32[16,1], index: 2, kind: input, shape index: {}]   ;;  %s3550_s3 = inlined_call_operand.hbm [shape: f32[24,128], index: 3, kind: input, shape index: {}]   ;;  %s3551_s4 = inlined_call_operand.hbm [shape: f32[320,128], index: 4, kind: input, shape index: {}]   ;;  %s3552_s5 = inlined_call_operand.hbm [shape: f32[2,8,32], index: 5, kind: output, shape index: {0}]   ;;  %s3553_s6 = inlined_call_operand.hbm [shape: f32[2,8,64], index: 6, kind: output, shape index: {1}]  }
   0x1   :  { %13 = vsyncpa [#allocation6], 0 }
   0x2   :  { %14 = vsyncpa [#allocation4], 0 }
   0x3   :  { %15 = vsyncpa [#allocation9], 0  ;;  %s3150_s21 = smov [#allocation2]  }
   0x4   :  { %s27_s22 = sshll.u32 %s3150_s21, 4  ;;  %s28_s22 = int_to_ptr.vmem [resolvable:$true] %s27_s22 }
   0x5   :  { %s3070_s23 = scalar_lea.vmem %s28_s22, 384  ;;  %p3075_p1 = scmp.lt.s32.totalorder %s28_s22, %s28_s22 }
   0x6   :  { %p3071_p0 = scmp.ne.s32.totalorder %s28_s22, %s3070_s23  ;;  %p3076_p2 = scmp.lt.s32.totalorder %s3070_s23, %s3070_s23 }
   0x8   :  { %p3077_p3 = por %p3076_p2, %p3075_p1 }
   0xa   :  { %p3078_p4 = pnand %p3077_p3, %p3071_p0 }
   0xc   :  { %3081 = shalt.err (!%p3078_p4)
}
   0xd   :  { %s3151_s24 = smov 128   ;;  %s3152_s25 = smov 8  }
   0xe   :  { %33 = dma.hbm_to_vmem [thread:$0]  %s3550_s3, 384, %s28_s22, [#allocation3], %s3151_s24, %s3151_s24, %s3152_s25  }
   0xf   :  { %s3153_s28 = smov [#allocation5]  }
  0x10   :  { %s39_s29 = sshll.u32 %s3153_s28, 4  ;;  %s40_s29 = int_to_ptr.vmem [resolvable:$true] %s39_s29 }
  0x11   :  { %s3090_s30 = scalar_lea.vmem %s40_s29, 5120  ;;  %p3095_p6 = scmp.lt.s32.totalorder %s40_s29, %s40_s29 }
  0x12   :  { %p3091_p5 = scmp.ne.s32.totalorder %s40_s29, %s3090_s30  ;;  %p3096_p7 = scmp.lt.s32.totalorder %s3090_s30, %s3090_s30 }
  0x14   :  { %p3097_p8 = por %p3096_p7, %p3095_p6 }
  0x16   :  { %p3098_p9 = pnand %p3097_p8, %p3091_p5 }
  0x18   :  { %3101 = shalt.err (!%p3098_p9)
}
  0x19   :  { %45 = dma.hbm_to_vmem [thread:$0]  %s3551_s4, 5120, %s40_s29, [#allocation6], %s3151_s24, %s3151_s24, %s3152_s25  }
  0x1a   :  { %3142 = dma.done.wait [#allocation3], 384  }
  0x1b   :  { %3143 = vsyncadd [#allocation3], 4294966912 }
  0x1c   :  { %3144 = dma.done.wait [#allocation6], 5120  }
  0x1d   :  { %3145 = vsyncadd [#allocation6], 4294962176  ;;  %vm64_vm0 = vcmask 261120   ;;  %v3222_v0 = vld [vmem:[%s3547_s0] sm:$0xff]  ;;  %v3227_v1 = vld [vmem:[%s3547_s0 + $0x8] sm:$0xff]  ;;  %vm221_vm1 = vcmask 523264  }
  0x1e   :  { %v65_v2 = vsel %vm64_vm0, %v3222_v0, 0.0  ;;  %v68_v3 = vsel %vm64_vm0, %v3227_v1, 0.0  ;;  %v107_v14 = vld [vmem:[#allocation5 + $0x18] sm:$0xff]  ;;  %v106_v15 = vld [vmem:[#allocation5 + $0x10] sm:$0xff]  ;;  %v105_v16 = vld [vmem:[#allocation5 + $0x8] sm:$0xff]  ;;  %vm3155_vm2 = vmmov 0  }
  0x1f   :  { %66 = vadd.xlane.f32.xlu0 %v65_v2  ;;  %2766 = vmatprep.subr.mxu1 %v107_v14  ;;  %v104_v17 = vld [vmem:[#allocation5] sm:$0xff]  ;;  %v2606_v25 = vld [vmem:[#allocation2] ss:$0 sm:$0xff]  ;;  %v2607_v27 = vld [vmem:[#allocation2 + $0x1] ss:$0 sm:$0xff]  ;;  %s3156_s0 = smov 96  }
  0x20   :  { %2767 = vmatpush3.msra.mxu1 %v107_v14  ;;  %v215_v34 = vld [vmem:[#allocation5 + $0x58] sm:$0xff]  ;;  %v214_v35 = vld [vmem:[#allocation5 + $0x50] sm:$0xff]  ;;  %v213_v36 = vld [vmem:[#allocation5 + $0x48] sm:$0xff]  ;;  %vm440_vm3 = vcmask 64512   ;;  %s3159_s15 = smov 88   ;;  %s3160_s16 = smov 120  }
  0x21   :  { %2768 = vmatprep.subr.mxu1 %v106_v15  ;;  %v212_v37 = vld [vmem:[#allocation5 + $0x40] sm:$0xff]  ;;  %v211_v38 = vld [vmem:[#allocation5 + $0x38] sm:$0xff]  ;;  %v210_v39 = vld [vmem:[#allocation5 + $0x30] sm:$0xff]  ;;  %s3161_s17 = smov 56   ;;  %s3162_s18 = smov 80   ;;  %vm1826_vm8 = vcmask 130048  }
  0x22   :  { %2769 = vmatpush3.msra.mxu1 %v106_v15  ;;  %v209_v40 = vld [vmem:[#allocation5 + $0x28] sm:$0xff]  ;;  %v208_v41 = vld [vmem:[#allocation5 + $0x20] sm:$0xff]  ;;  %v350_v14 = vld [vmem:[#allocation5 + $0x78] sm:$0xff]  ;;  %s3163_s19 = smov 112   ;;  %s3164_s20 = smov 48   ;;  %vm1829_vm9 = vcmask 195584  }
  0x23   :  { %69 = vadd.xlane.f32.xlu0 %v68_v3  ;;  %2770 = vmatprep.subr.mxu1 %v105_v16  ;;  %v2608_v42 = vld [vmem:[#allocation2 + $0x2] ss:$0 sm:$0xff]  ;;  %v2613_v57 = vld [vmem:[#allocation2 + $0x3] ss:$0 sm:$0xff]  ;;  %v349_v15 = vld [vmem:[#allocation5 + $0x70] sm:$0xff]  ;;  %s3165_s21 = smov 72  }
  0x24   :  { %2771 = vmatpush3.msra.mxu1 %v105_v16  ;;  %2796 = vmatprep.subr.mxu0 %v350_v14  ;;  %v348_v16 = vld [vmem:[#allocation5 + $0x68] sm:$0xff]  ;;  %s3166_s22 = smov 104   ;;  %s3167_s23 = smov 40   ;;  %vm2098_vm14 = vcmask 1040384   ;;  %vm2105_vm15 = vcmask 1046528  }
  0x25   :  { %2772 = vmatprep.subr.mxu1 %v104_v17  ;;  %2797 = vmatpush3.msra.mxu0 %v350_v14  ;;  %s3168_s26 = smov 16   ;;  %s3169_s27 = smov 24  }
  0x26   :  { %2773 = vmatpush3.msra.mxu1 %v104_v17  ;;  %2798 = vmatprep.subr.mxu0 %v349_v15  ;;  %v347_v17 = vld [vmem:[#allocation5 + $0x60] sm:$0xff] }
  0x27   :  { %2777 = vmatprep.subr.mxu1 %v215_v34  ;;  %2799 = vmatpush3.msra.mxu0 %v349_v15 }
  0x28   :  { %2800 = vmatprep.subr.mxu0 %v348_v16 }
  0x29   :  { %2801 = vmatpush3.msra.mxu0 %v348_v16 }
  0x2a   :  { %2802 = vmatprep.subr.mxu0 %v347_v17 }
  0x2b   :  { %2803 = vmatpush3.msra.mxu0 %v347_v17 }
  0xa8   :  { %v67_v4 = vpop.xlane.xlu0 %66 }
  0xa9   :  { %v72_v5 = vmul.f32 0.03125, %v67_v4 }
  0xab   :  { %v74_v6 = vsub.f32 %v3222_v0, %v72_v5 }
  0xac   :  { %v70_v7 = vpop.xlane.xlu0 %69 }
  0xad   :  { %v73_v8 = vmul.f32 0.03125, %v70_v7  ;;  %v76_v9 = vmul.f32 %v74_v6, %v74_v6 }
  0xaf   :  { %v75_v10 = vsub.f32 %v3227_v1, %v73_v8  ;;  %v78_v11 = vsel %vm64_vm0, %v76_v9, 0.0 }
  0xb0   :  { %79 = vadd.xlane.f32.xlu1 %v78_v11 }
  0xb1   :  { %v77_v12 = vmul.f32 %v75_v10, %v75_v10 }
  0xb3   :  { %v81_v13 = vsel %vm64_vm0, %v77_v12, 0.0 }
  0xb4   :  { %82 = vadd.xlane.f32.xlu1 %v81_v13 }
 0x139   :  { %v80_v18 = vpop.xlane.xlu1 %79 }
 0x13a   :  { %v84_v19 = vmul.f32 0.03125, %v80_v18 }
 0x13c   :  { %v86_v20 = vadd.f32 1e-05, %v84_v19 }
 0x13d   :  { %v83_v21 = vpop.xlane.xlu1 %82 }
 0x13e   :  { %2974 = vrsqrt.f32 %v86_v20  ;;  %v85_v22 = vmul.f32 0.03125, %v83_v21 }
 0x140   :  { %v87_v23 = vadd.f32 1e-05, %v85_v22 }
 0x142   :  { %2976 = vrsqrt.f32 %v87_v23 }
 0x14b   :  { %v2975_v24 = vpop.eup %2974 }
 0x14c   :  { %v90_v26 = vmul.f32 %v2975_v24, %v74_v6 }
 0x14e   :  { %v96_v28 = vmul.f32 %v2606_v25, %v90_v26 }
 0x14f   :  { %v2977_v29 = vpop.eup %2976 }
 0x150   :  { %v91_v30 = vmul.f32 %v2977_v29, %v75_v10  ;;  %v102_v31 = vadd.f32 %v2607_v27, %v96_v28 }
 0x152   :  { %v97_v32 = vmul.f32 %v2606_v25, %v91_v30  ;;  %2774 = vmatprep.mubr.msk.f32.mxu1 %vm64_vm0, %v102_v31  ;;  %v2616_v25 = vld [vmem:[#allocation2 + $0x4] ss:$0 sm:$0xff]  ;;  %v2617_v30 = vld [vmem:[#allocation2 + $0x5] ss:$0 sm:$0xff] }
 0x154   :  { %v103_v33 = vadd.f32 %v2607_v27, %v97_v32 }
 0x156   :  { %2775 = vmatmul.mubr.msk.f32.vlgmr.msra.gmra.mxu1 %vm64_vm0, %v103_v33 }
 0x157   :  { %2778 = vmatpush3.msra.mxu1 %v215_v34  ;;  %v3154_v34 = vmov 0.0  }
 0x158   :  { %2779 = vmatprep.subr.mxu1 %v214_v35  ;;  %2807 = vmatprep.subr.mxu0 %v3154_v34 }
 0x159   :  { %2780 = vmatpush3.msra.mxu1 %v214_v35  ;;  %v2618_v35 = vld [vmem:[#allocation2 + $0x6] ss:$0 sm:$0xff] }
 0x15a   :  { %2781 = vmatprep.subr.mxu1 %v213_v36 }
 0x15b   :  { %2782 = vmatpush3.msra.mxu1 %v213_v36 }
 0x15c   :  { %2783 = vmatprep.subr.mxu1 %v212_v37 }
 0x15d   :  { %2784 = vmatpush3.msra.mxu1 %v212_v37 }
 0x15e   :  { %2785 = vmatprep.subr.mxu1 %v211_v38 }
 0x15f   :  { %2786 = vmatpush3.msra.mxu1 %v211_v38 }
 0x160   :  { %2787 = vmatprep.subr.mxu1 %v210_v39 }
 0x161   :  { %2788 = vmatpush3.msra.mxu1 %v210_v39 }
 0x162   :  { %2789 = vmatprep.subr.mxu1 %v209_v40 }
 0x163   :  { %2790 = vmatpush3.msra.mxu1 %v209_v40 }
 0x164   :  { %2791 = vmatprep.subr.mxu1 %v208_v41 }
 0x165   :  { %2792 = vmatpush3.msra.mxu1 %v208_v41 }
 0x166   :  { %2812 = vmatprep.subr.mxu1 %v3154_v34 }
 0x216   :  { %v2776_v43 = vpop.f32.mrf.mxu1 }
 0x217   :  { %v191_v44 = vadd.f32 %v2776_v43, %v2608_v42  ;;  %v596_v43 = vlaneseq }
 0x218   :  { %v185_v45 = vpop.f32.mrf.mxu1 }
 0x219   :  { %v2612_v46 = vmul.f32 -1.442695, %v191_v44  ;;  %v186_v47 = vadd.f32 %v2608_v42, %v185_v45  ;;  %v3157_v42 = vmov 0   ;;  %v597_v45 = vshrl.u32 %v596_v43, 7 }
 0x21a   :  { %2973 = vset.pattern.permute.xlu1 %v3157_v42  ;;  %2972 = vset.pattern.permute.xlu0 %v3157_v42 }
 0x21b   :  { %2978 = vpow2.f32 %v2612_v46  ;;  %v2611_v48 = vmul.f32 -1.442695, %v186_v47  ;;  %v54_v46 = vld [vmem:[%s3548_s1] sm:$0x1] }
 0x21c   :  { %vm56_vm5 = vcmp.gt.f32.partialorder %v54_v46, 0.0 }
 0x21d   :  { %2980 = vpow2.f32 %v2611_v48 }
 0x228   :  { %v2979_v49 = vpop.eup %2978 }
 0x229   :  { %v201_v50 = vadd.f32 1.0, %v2979_v49  ;;  %v594_v49 = vsel %vm56_vm5, 1, %v3157_v42 }
 0x22a   :  { %v2981_v51 = vpop.eup %2980 }
 0x22b   :  { %v200_v52 = vadd.f32 1.0, %v2981_v51  ;;  %2982 = vrcp.f32 %v201_v50 }
 0x22d   :  { %2984 = vrcp.f32 %v200_v52 }
 0x238   :  { %v2983_v53 = vpop.eup %2982 }
 0x239   :  { %v207_v56 = vmul.f32 %v2983_v53, %v191_v44  ;;  %v55_v44 = vld [vmem:[%s3548_s1 + $0x1] sm:$0x1]  ;;  %s3158_s1 = smov 64  }
 0x23a   :  { %v2985_v54 = vpop.eup %2984  ;;  %vm57_vm4 = vcmp.gt.f32.partialorder %v55_v44, 0.0 }
 0x23b   :  { %v206_v55 = vmul.f32 %v2985_v54, %v186_v47  ;;  %v598_v47 = vsub.s32 0, %v597_v45  ;;  %v595_v48 = vsel %vm57_vm4, 1, %v3157_v42 }
 0x23d   :  { %2793 = vmatprep.mubr.msk.f32.mxu1 %vm221_vm1, %v206_v55  ;;  %v3295_v50 = vrot.slane %v595_v48, %v598_v47  ;;  %v3297_v51 = vrot.slane %v594_v49, %v598_v47 }
 0x23e   :  { %2794 = vmatmul.mubr.msk.f32.vlgmr.msra.gmra.mxu1 %vm221_vm1, %v207_v56 }
 0x23f   :  { %2814 = vmatprep.mubr.msk.f32.mxu1 %vm3155_vm2, %v3154_v34  ;;  %vm605_vm6 = vcmp.eq.s32.totalorder %v3295_v50, 1  ;;  %vm604_vm7 = vcmp.eq.s32.totalorder %v3297_v51, 1  ;;  %v1832_v50 = vld [vmem:[#allocation5 + $0x80] sm:$0xff] }
 0x2fe   :  { %v2795_v58 = vpop.f32.mrf.mxu1 }
 0x2ff   :  { %v300_v59 = vadd.f32 %v2795_v58, %v2613_v57 }
 0x300   :  { %v294_v60 = vpop.f32.mrf.mxu1 }
 0x301   :  { %v304_v61 = vmul.f32 0.5, %v300_v59  ;;  %v295_v62 = vadd.f32 %v2613_v57, %v294_v60 }
 0x303   :  { %v3242_v63 = vadd.f32 %v304_v61, %v3227_v1  ;;  %v303_v2 = vmul.f32 0.5, %v295_v62 }
 0x305   :  { %v3245_v3 = vadd.f32 %v303_v2, %v3222_v0  ;;  %v312_v4 = vsel %vm64_vm0, %v3242_v63, 0.0 }
 0x306   :  { %313 = vadd.xlane.f32.xlu1 %v312_v4 }
 0x307   :  { %v309_v5 = vsel %vm64_vm0, %v3245_v3, 0.0 }
 0x308   :  { %310 = vadd.xlane.f32.xlu0 %v309_v5 }
 0x38f   :  { %v314_v6 = vpop.xlane.xlu1 %313 }
 0x390   :  { %v316_v7 = vmul.f32 0.03125, %v314_v6 }
 0x391   :  { %v311_v8 = vpop.xlane.xlu0 %310 }
 0x392   :  { %v318_v9 = vsub.f32 %v3242_v63, %v316_v7  ;;  %v315_v10 = vmul.f32 0.03125, %v311_v8 }
 0x394   :  { %v317_v1 = vsub.f32 %v3245_v3, %v315_v10  ;;  %v320_v11 = vmul.f32 %v318_v9, %v318_v9 }
 0x396   :  { %v324_v0 = vsel %vm64_vm0, %v320_v11, 0.0  ;;  %v319_v12 = vmul.f32 %v317_v1, %v317_v1 }
 0x397   :  { %325 = vadd.xlane.f32.xlu1 %v324_v0 }
 0x398   :  { %v321_v13 = vsel %vm64_vm0, %v319_v12, 0.0 }
 0x399   :  { %322 = vadd.xlane.f32.xlu0 %v321_v13 }
 0x420   :  { %v326_v18 = vpop.xlane.xlu1 %325 }
 0x421   :  { %v328_v19 = vmul.f32 0.03125, %v326_v18 }
 0x422   :  { %v323_v20 = vpop.xlane.xlu0 %322 }
 0x423   :  { %v330_v21 = vadd.f32 1e-05, %v328_v19  ;;  %v327_v22 = vmul.f32 0.03125, %v323_v20 }
 0x425   :  { %2986 = vrsqrt.f32 %v330_v21  ;;  %v329_v23 = vadd.f32 1e-05, %v327_v22 }
 0x427   :  { %2988 = vrsqrt.f32 %v329_v23 }
 0x432   :  { %v2987_v24 = vpop.eup %2986 }
 0x433   :  { %v334_v26 = vmul.f32 %v2987_v24, %v318_v9 }
 0x434   :  { %v2989_v27 = vpop.eup %2988 }
 0x435   :  { %v333_v28 = vmul.f32 %v2989_v27, %v317_v1  ;;  %v340_v29 = vmul.f32 %v2616_v25, %v334_v26 }
 0x437   :  { %v339_v31 = vmul.f32 %v2616_v25, %v333_v28  ;;  %v346_v33 = vadd.f32 %v2617_v30, %v340_v29 }
 0x439   :  { %v345_v32 = vadd.f32 %v2617_v30, %v339_v31 }
 0x43b   :  { %2804 = vmatprep.mubr.msk.f32.mxu0 %vm64_vm0, %v345_v32 }
 0x43c   :  { %2805 = vmatmul.mubr.msk.f32.vlgmr.msra.gmra.mxu0 %vm64_vm0, %v346_v33 }
 0x43d   :  { %2809 = vmatprep.mubr.msk.f32.mxu0 %vm3155_vm2, %v3154_v34 }
 0x4fc   :  { %v2806_v36 = vpop.f32.mrf.mxu0 }
 0x4fd   :  { %v3263_v37 = vadd.f32 %v2806_v36, %v2618_v35 }
 0x4fe   :  { %v428_v38 = vpop.f32.mrf.mxu0 }
 0x4ff   :  { %v3265_v39 = vadd.f32 %v2618_v35, %v428_v38  ;;  %516 = vrot.lane.b32.xlu1 %v3263_v37, %s3156_s0 }
 0x501   :  { %438 = vrot.lane.b32.xlu0 %v3265_v39, %s3156_s0 }
 0x571   :  { %v517_v40 = vpop.permute.xlu1 %516 }
 0x572   :  { %1927 = vst.msk [vmem:[#allocation8 + $0x8] sm:$0xff] %vm221_vm1, %v517_v40  ;;  %2813 = vmatpush3.xpose.msk.msra.mxu1 %vm440_vm3, %v517_v40 }
 0x573   :  { %v439_v41 = vpop.permute.xlu0 %438  ;;  %2822 = vmatprep.subr.mxu1 %v3154_v34 }
 0x574   :  { %1926 = vst.msk [vmem:[#allocation8] sm:$0xff] %vm221_vm1, %v439_v41  ;;  %2808 = vmatpush3.xpose.msk.msra.mxu0 %vm440_vm3, %v439_v41 }
 0x575   :  { %2815 = vmatmul.mubr.msk.f32.vlgmr.msra.gmra.mxu1 %vm440_vm3, %v3263_v37  ;;  %2817 = vmatprep.subr.mxu0 %v3154_v34 }
 0x576   :  { %2824 = vmatprep.mubr.msk.f32.mxu1 %vm3155_vm2, %v3154_v34 }
 0x577   :  { %2810 = vmatmul.mubr.msk.f32.vlgmr.msra.gmra.mxu0 %vm440_vm3, %v3265_v39 }
 0x578   :  { %2819 = vmatprep.mubr.msk.f32.mxu0 %vm3155_vm2, %v3154_v34 }
 0x635   :  { %v588_v52 = vpop.f32.mrf.mxu1 }
 0x636   :  { %v593_v53 = vmul.f32 0.35355338, %v588_v52 }
 0x637   :  { %v511_v54 = vpop.f32.mrf.mxu0  ;;  %v2816_v55 = vpop.f32.mrf.mxu1 }
 0x638   :  { %v592_v56 = vmul.f32 0.35355338, %v511_v54  ;;  %v607_v57 = vsel %vm605_vm6, %v593_v53, -1e+30 }
 0x639   :  { %v2811_v58 = vpop.f32.mrf.mxu0  ;;  %v611_v59 = vsel %vm440_vm3, %v607_v57, -inf }
 0x63a   :  { %612 = vmax.xlane.f32.xlu0 %v611_v59  ;;  %v606_v60 = vsel %vm604_vm7, %v592_v56, -1e+30 }
 0x63b   :  { %v608_v61 = vsel %vm440_vm3, %v606_v60, -inf }
 0x63c   :  { %609 = vmax.xlane.f32.xlu1 %v608_v61 }
 0x6c3   :  { %v613_v62 = vpop.xlane.xlu0 %612 }
 0x6c4   :  { %v615_v2 = vsub.f32 %v607_v57, %v613_v62 }
 0x6c5   :  { %v610_v4 = vpop.xlane.xlu1 %609 }
 0x6c6   :  { %v618_v5 = vmul.f32 1.442695, %v615_v2  ;;  %v614_v6 = vsub.f32 %v606_v60, %v610_v4 }
 0x6c8   :  { %2990 = vpow2.f32 %v618_v5  ;;  %v616_v7 = vmul.f32 1.442695, %v614_v6 }
 0x6ca   :  { %2992 = vpow2.f32 %v616_v7 }
 0x6d5   :  { %v2991_v8 = vpop.eup %2990 }
 0x6d6   :  { %v621_v9 = vsel %vm605_vm6, %v2991_v8, 0.0 }
 0x6d7   :  { %v2993_v10 = vpop.eup %2992  ;;  %v625_v1 = vsel %vm440_vm3, %v621_v9, 0.0 }
 0x6d8   :  { %626 = vadd.xlane.f32.xlu1 %v625_v1  ;;  %v620_v11 = vsel %vm604_vm7, %v2993_v10, 0.0 }
 0x6d9   :  { %v622_v0 = vsel %vm440_vm3, %v620_v11, 0.0 }
 0x6da   :  { %623 = vadd.xlane.f32.xlu0 %v622_v0 }
 0x6e9   :  { %710 = vrot.lane.b32.xlu1 %v3263_v37, %s3158_s1 }
 0x6ed   :  { %788 = vrot.lane.b32.xlu1 %v3265_v39, %s3159_s15 }
 0x6f0   :  { %634 = vrot.lane.b32.xlu0 %v3265_v39, %s3158_s1 }
 0x6f1   :  { %866 = vrot.lane.b32.xlu1 %v3263_v37, %s3159_s15 }
 0x6f4   :  { %786 = vrot.lane.b32.xlu0 %v3265_v39, %s3160_s16 }
 0x6f5   :  { %864 = vrot.lane.b32.xlu1 %v3263_v37, %s3160_s16 }
 0x761   :  { %v627_v12 = vpop.xlane.xlu1 %626 }
 0x762   :  { %2994 = vrcp.f32 %v627_v12 }
 0x763   :  { %v624_v13 = vpop.xlane.xlu0 %623 }
 0x764   :  { %2996 = vrcp.f32 %v624_v13 }
 0x765   :  { %v711_v14 = vpop.permute.xlu1 %710 }
 0x766   :  { %2823 = vmatpush3.msra.mxu1 %v711_v14 }
 0x767   :  { %v635_v15 = vpop.permute.xlu0 %634  ;;  %2832 = vmatprep.subr.mxu1 %v3154_v34 }
 0x768   :  { %2818 = vmatpush3.msra.mxu0 %v635_v15 }
 0x769   :  { %2827 = vmatprep.subr.mxu0 %v3154_v34  ;;  %v789_v16 = vpop.permute.xlu1 %788 }
 0x76b   :  { %v787_v25 = vpop.permute.xlu0 %786 }
 0x76d   :  { %v867_v18 = vpop.permute.xlu1 %866 }
 0x76f   :  { %v2995_v17 = vpop.eup %2994 }
 0x770   :  { %v631_v19 = vmul.f32 %v2995_v17, %v621_v9 }
 0x771   :  { %v2997_v20 = vpop.eup %2996  ;;  %v865_v24 = vpop.permute.xlu1 %864 }
 0x772   :  { %v633_v21 = vsel %vm605_vm6, %v631_v19, 0.0  ;;  %v630_v22 = vmul.f32 %v2997_v20, %v620_v11 }
 0x773   :  { %2825 = vmatmul.mubr.msk.f32.vlgmr.msra.gmra.mxu1 %vm440_vm3, %v633_v21 }
 0x774   :  { %2833 = vmatpush3.xpose.msk.msra.mxu1 %vm440_vm3, %v867_v18  ;;  %v632_v23 = vsel %vm604_vm7, %v630_v22, 0.0  ;;  %2834 = vmatprep.mubr.msk.f32.mxu1 %vm3155_vm2, %v3154_v34 }
 0x775   :  { %2820 = vmatmul.mubr.msk.f32.vlgmr.msra.gmra.mxu0 %vm440_vm3, %v632_v23  ;;  %2842 = vmatprep.subr.mxu1 %v3154_v34 }
 0x776   :  { %2828 = vmatpush3.xpose.msk.msra.mxu0 %vm440_vm3, %v789_v16  ;;  %2829 = vmatprep.mubr.msk.f32.mxu0 %vm3155_vm2, %v3154_v34 }
 0x777   :  { %2835 = vmatmul.mubr.msk.f32.vlgmr.msra.gmra.mxu1 %vm440_vm3, %v865_v24  ;;  %2837 = vmatprep.subr.mxu0 %v3154_v34 }
 0x778   :  { %2844 = vmatprep.mubr.msk.f32.mxu1 %vm3155_vm2, %v3154_v34 }
 0x779   :  { %2830 = vmatmul.mubr.msk.f32.vlgmr.msra.gmra.mxu0 %vm440_vm3, %v787_v25 }
 0x77a   :  { %2839 = vmatprep.mubr.msk.f32.mxu0 %vm3155_vm2, %v3154_v34 }
 0x833   :  { %v3341_v26 = vpop.f32.mrf.mxu1 }
 0x835   :  { %v3343_v27 = vpop.f32.mrf.mxu0  ;;  %v2826_v28 = vpop.f32.mrf.mxu1 }
 0x837   :  { %v2821_v29 = vpop.f32.mrf.mxu0  ;;  %v938_v30 = vpop.f32.mrf.mxu1 }
 0x838   :  { %v943_v31 = vmul.f32 0.35355338, %v938_v30 }
 0x839   :  { %v860_v32 = vpop.f32.mrf.mxu0  ;;  %v2836_v33 = vpop.f32.mrf.mxu1 }
 0x83a   :  { %v942_v35 = vmul.f32 0.35355338, %v860_v32  ;;  %v945_v36 = vsel %vm605_vm6, %v943_v31, -1e+30 }
 0x83b   :  { %v2831_v38 = vpop.f32.mrf.mxu0  ;;  %v949_v40 = vsel %vm440_vm3, %v945_v36, -inf }
 0x83c   :  { %950 = vmax.xlane.f32.xlu1 %v949_v40  ;;  %v944_v41 = vsel %vm604_vm7, %v942_v35, -1e+30 }
 0x83d   :  { %v946_v43 = vsel %vm440_vm3, %v944_v41, -inf }
 0x83e   :  { %947 = vmax.xlane.f32.xlu0 %v946_v43 }
 0x84d   :  { %1048 = vrot.lane.b32.xlu1 %v3263_v37, %s3161_s17 }
 0x851   :  { %1126 = vrot.lane.b32.xlu1 %v3265_v39, %s3162_s18 }
 0x855   :  { %1204 = vrot.lane.b32.xlu1 %v3263_v37, %s3162_s18 }
 0x859   :  { %1202 = vrot.lane.b32.xlu1 %v3263_v37, %s3163_s19 }
 0x8c5   :  { %v951_v44 = vpop.xlane.xlu1 %950 }
 0x8c6   :  { %v953_v45 = vsub.f32 %v945_v36, %v951_v44 }
 0x8c7   :  { %v948_v46 = vpop.xlane.xlu0 %947 }
 0x8c8   :  { %v956_v47 = vmul.f32 1.442695, %v953_v45  ;;  %v952_v48 = vsub.f32 %v944_v41, %v948_v46 }
 0x8c9   :  { %v1049_v49 = vpop.permute.xlu1 %1048 }
 0x8ca   :  { %2998 = vpow2.f32 %v956_v47  ;;  %v954_v52 = vmul.f32 1.442695, %v952_v48  ;;  %2843 = vmatpush3.msra.mxu1 %v1049_v49 }
 0x8cb   :  { %2852 = vmatprep.subr.mxu1 %v3154_v34 }
 0x8cc   :  { %3000 = vpow2.f32 %v954_v52 }
 0x8cd   :  { %v1127_v62 = vpop.permute.xlu1 %1126 }
 0x8d1   :  { %v1205_v4 = vpop.permute.xlu1 %1204 }
 0x8d5   :  { %v1203_v9 = vpop.permute.xlu1 %1202 }
 0x8d7   :  { %v2999_v53 = vpop.eup %2998 }
 0x8d8   :  { %v959_v54 = vsel %vm605_vm6, %v2999_v53, 0.0 }
 0x8d9   :  { %v3001_v55 = vpop.eup %3000  ;;  %v963_v56 = vsel %vm440_vm3, %v959_v54, 0.0 }
 0x8da   :  { %964 = vadd.xlane.f32.xlu0 %v963_v56  ;;  %v958_v57 = vsel %vm604_vm7, %v3001_v55, 0.0 }
 0x8db   :  { %v960_v58 = vsel %vm440_vm3, %v958_v57, 0.0 }
 0x8de   :  { %961 = vadd.xlane.f32.xlu0 %v960_v58 }
 0x8f4   :  { %972 = vrot.lane.b32.xlu0 %v3265_v39, %s3161_s17 }
 0x8f8   :  { %1124 = vrot.lane.b32.xlu0 %v3265_v39, %s3163_s19 }
 0x963   :  { %v965_v59 = vpop.xlane.xlu0 %964 }
 0x964   :  { %3002 = vrcp.f32 %v965_v59 }
 0x967   :  { %v962_v60 = vpop.xlane.xlu0 %961 }
 0x968   :  { %3004 = vrcp.f32 %v962_v60 }
 0x96b   :  { %v973_v61 = vpop.permute.xlu0 %972 }
 0x96c   :  { %2838 = vmatpush3.msra.mxu0 %v973_v61 }
 0x96d   :  { %2847 = vmatprep.subr.mxu0 %v3154_v34 }
 0x96f   :  { %v1125_v1 = vpop.permute.xlu0 %1124 }
 0x971   :  { %v3003_v2 = vpop.eup %3002 }
 0x972   :  { %v969_v5 = vmul.f32 %v3003_v2, %v959_v54 }
 0x974   :  { %v971_v6 = vsel %vm605_vm6, %v969_v5, 0.0 }
 0x975   :  { %v3005_v7 = vpop.eup %3004  ;;  %2845 = vmatmul.mubr.msk.f32.vlgmr.msra.gmra.mxu1 %vm440_vm3, %v971_v6 }
 0x976   :  { %2853 = vmatpush3.xpose.msk.msra.mxu1 %vm440_vm3, %v1205_v4  ;;  %2854 = vmatprep.mubr.msk.f32.mxu1 %vm3155_vm2, %v3154_v34  ;;  %v968_v8 = vmul.f32 %v3005_v7, %v958_v57 }
 0x977   :  { %2862 = vmatprep.subr.mxu1 %v3154_v34 }
 0x978   :  { %v970_v10 = vsel %vm604_vm7, %v968_v8, 0.0 }
 0x979   :  { %2840 = vmatmul.mubr.msk.f32.vlgmr.msra.gmra.mxu0 %vm440_vm3, %v970_v10  ;;  %2855 = vmatmul.mubr.msk.f32.vlgmr.msra.gmra.mxu1 %vm440_vm3, %v1203_v9 }
 0x97a   :  { %2848 = vmatpush3.xpose.msk.msra.mxu0 %vm440_vm3, %v1127_v62  ;;  %2849 = vmatprep.mubr.msk.f32.mxu0 %vm3155_vm2, %v3154_v34 }
 0x97b   :  { %2857 = vmatprep.subr.mxu0 %v3154_v34  ;;  %2864 = vmatprep.mubr.msk.f32.mxu1 %vm3155_vm2, %v3154_v34 }
 0x97d   :  { %2850 = vmatmul.mubr.msk.f32.vlgmr.msra.gmra.mxu0 %vm440_vm3, %v1125_v1 }
 0x97e   :  { %2859 = vmatprep.mubr.msk.f32.mxu0 %vm3155_vm2, %v3154_v34 }
 0xa35   :  { %v3385_v11 = vpop.f32.mrf.mxu1 }
 0xa37   :  { %v2846_v0 = vpop.f32.mrf.mxu1 }
 0xa39   :  { %v3387_v12 = vpop.f32.mrf.mxu0  ;;  %v1276_v13 = vpop.f32.mrf.mxu1 }
 0xa3a   :  { %v1281_v14 = vmul.f32 0.35355338, %v1276_v13 }
 0xa3b   :  { %v2841_v15 = vpop.f32.mrf.mxu0  ;;  %v2856_v16 = vpop.f32.mrf.mxu1 }
 0xa3c   :  { %v1283_v17 = vsel %vm605_vm6, %v1281_v14, -1e+30 }
 0xa3d   :  { %v1198_v18 = vpop.f32.mrf.mxu0  ;;  %v1287_v19 = vsel %vm440_vm3, %v1283_v17, -inf }
 0xa3e   :  { %v1280_v20 = vmul.f32 0.35355338, %v1198_v18  ;;  %1288 = vmax.xlane.f32.xlu1 %v1287_v19 }
 0xa3f   :  { %v2851_v21 = vpop.f32.mrf.mxu0 }
 0xa40   :  { %v1282_v22 = vsel %vm604_vm7, %v1280_v20, -1e+30 }
 0xa41   :  { %v1284_v23 = vsel %vm440_vm3, %v1282_v22, -inf }
 0xa42   :  { %1285 = vmax.xlane.f32.xlu0 %v1284_v23 }
 0xa4f   :  { %1386 = vrot.lane.b32.xlu1 %v3263_v37, %s3164_s20 }
 0xa53   :  { %1464 = vrot.lane.b32.xlu1 %v3265_v39, %s3165_s21 }
 0xa57   :  { %1542 = vrot.lane.b32.xlu1 %v3263_v37, %s3165_s21 }
 0xa5b   :  { %1540 = vrot.lane.b32.xlu1 %v3263_v37, %s3166_s22 }
 0xac7   :  { %v1289_v24 = vpop.xlane.xlu1 %1288 }
 0xac8   :  { %v1291_v25 = vsub.f32 %v1283_v17, %v1289_v24 }
 0xaca   :  { %v1294_v28 = vmul.f32 1.442695, %v1291_v25 }
 0xacb   :  { %v1387_v29 = vpop.permute.xlu1 %1386  ;;  %v1286_v30 = vpop.xlane.xlu0 %1285 }
 0xacc   :  { %3006 = vpow2.f32 %v1294_v28  ;;  %v1290_v31 = vsub.f32 %v1282_v22, %v1286_v30  ;;  %2863 = vmatpush3.msra.mxu1 %v1387_v29 }
 0xacd   :  { %2872 = vmatprep.subr.mxu1 %v3154_v34 }
 0xace   :  { %v1292_v32 = vmul.f32 1.442695, %v1290_v31 }
 0xacf   :  { %v1465_v46 = vpop.permute.xlu1 %1464 }
 0xad0   :  { %3008 = vpow2.f32 %v1292_v32  ;;  %v1834_v32 = vld [vmem:[#allocation5 + $0x90] sm:$0xff] }
 0xad3   :  { %v1543_v48 = vpop.permute.xlu1 %1542 }
 0xad7   :  { %v1541_v55 = vpop.permute.xlu1 %1540 }
 0xad9   :  { %v3007_v33 = vpop.eup %3006 }
 0xada   :  { %v1297_v35 = vsel %vm605_vm6, %v3007_v33, 0.0  ;;  %v1833_v33 = vld [vmem:[#allocation5 + $0x88] sm:$0xff] }
 0xadb   :  { %v1301_v36 = vsel %vm440_vm3, %v1297_v35, 0.0 }
 0xadc   :  { %1302 = vadd.xlane.f32.xlu0 %v1301_v36 }
 0xadd   :  { %v3009_v38 = vpop.eup %3008 }
 0xade   :  { %v1296_v40 = vsel %vm604_vm7, %v3009_v38, 0.0 }
 0xadf   :  { %v1298_v41 = vsel %vm440_vm3, %v1296_v40, 0.0 }
 0xae0   :  { %1299 = vadd.xlane.f32.xlu0 %v1298_v41 }
 0xaf6   :  { %1310 = vrot.lane.b32.xlu0 %v3265_v39, %s3164_s20 }
 0xafa   :  { %1462 = vrot.lane.b32.xlu0 %v3265_v39, %s3166_s22 }
 0xb65   :  { %v1303_v43 = vpop.xlane.xlu0 %1302 }
 0xb66   :  { %3010 = vrcp.f32 %v1303_v43 }
 0xb69   :  { %v1300_v44 = vpop.xlane.xlu0 %1299 }
 0xb6a   :  { %3012 = vrcp.f32 %v1300_v44 }
 0xb6d   :  { %v1311_v45 = vpop.permute.xlu0 %1310 }
 0xb6e   :  { %2858 = vmatpush3.msra.mxu0 %v1311_v45 }
 0xb6f   :  { %2867 = vmatprep.subr.mxu0 %v3154_v34 }
 0xb71   :  { %v1463_v57 = vpop.permute.xlu0 %1462 }
 0xb73   :  { %v3011_v47 = vpop.eup %3010 }
 0xb74   :  { %v1307_v49 = vmul.f32 %v3011_v47, %v1297_v35 }
 0xb76   :  { %v1309_v52 = vsel %vm605_vm6, %v1307_v49, 0.0 }
 0xb77   :  { %v3013_v53 = vpop.eup %3012  ;;  %2865 = vmatmul.mubr.msk.f32.vlgmr.msra.gmra.mxu1 %vm440_vm3, %v1309_v52 }
 0xb78   :  { %2873 = vmatpush3.xpose.msk.msra.mxu1 %vm440_vm3, %v1543_v48  ;;  %2874 = vmatprep.mubr.msk.f32.mxu1 %vm3155_vm2, %v3154_v34  ;;  %v1306_v54 = vmul.f32 %v3013_v53, %v1296_v40 }
 0xb79   :  { %2882 = vmatprep.subr.mxu1 %v3154_v34 }
 0xb7a   :  { %v1308_v56 = vsel %vm604_vm7, %v1306_v54, 0.0 }
 0xb7b   :  { %2860 = vmatmul.mubr.msk.f32.vlgmr.msra.gmra.mxu0 %vm440_vm3, %v1308_v56  ;;  %2875 = vmatmul.mubr.msk.f32.vlgmr.msra.gmra.mxu1 %vm440_vm3, %v1541_v55  ;;  %v2645_v55 = vld [vmem:[#allocation2 + $0x7] ss:$0 sm:$0xff] }
 0xb7c   :  { %2868 = vmatpush3.xpose.msk.msra.mxu0 %vm440_vm3, %v1465_v46  ;;  %2869 = vmatprep.mubr.msk.f32.mxu0 %vm3155_vm2, %v3154_v34 }
 0xb7d   :  { %2877 = vmatprep.subr.mxu0 %v3154_v34  ;;  %2884 = vmatprep.mubr.msk.f32.mxu1 %vm3155_vm2, %v3154_v34 }
 0xb7f   :  { %2870 = vmatmul.mubr.msk.f32.vlgmr.msra.gmra.mxu0 %vm440_vm3, %v1463_v57 }
 0xb80   :  { %2879 = vmatprep.mubr.msk.f32.mxu0 %vm3155_vm2, %v3154_v34 }
 0xc37   :  { %v1458_v58 = vpop.f32.mrf.mxu1 }
 0xc39   :  { %v2866_v59 = vpop.f32.mrf.mxu1 }
 0xc3b   :  { %v1382_v60 = vpop.f32.mrf.mxu0  ;;  %v1614_v61 = vpop.f32.mrf.mxu1 }
 0xc3c   :  { %v1619_v62 = vmul.f32 0.35355338, %v1614_v61 }
 0xc3d   :  { %v2861_v2 = vpop.f32.mrf.mxu0  ;;  %v2876_v4 = vpop.f32.mrf.mxu1 }
 0xc3e   :  { %v1621_v5 = vsel %vm605_vm6, %v1619_v62, -1e+30  ;;  %v59_v62 = vld [vmem:[%s3549_s2 + $0x8] sm:$0xff] }
 0xc3f   :  { %v1536_v6 = vpop.f32.mrf.mxu0  ;;  %v1625_v7 = vsel %vm440_vm3, %v1621_v5, -inf  ;;  %vm61_vm10 = vcmp.gt.f32.partialorder %v59_v62, 0.0 }
 0xc40   :  { %v1618_v8 = vmul.f32 0.35355338, %v1536_v6  ;;  %1626 = vmax.xlane.f32.xlu1 %v1625_v7 }
 0xc41   :  { %v2871_v9 = vpop.f32.mrf.mxu0 }
 0xc42   :  { %v1620_v10 = vsel %vm604_vm7, %v1618_v8, -1e+30 }
 0xc43   :  { %v1622_v34 = vsel %vm440_vm3, %v1620_v10, -inf }
 0xc44   :  { %1623 = vmax.xlane.f32.xlu0 %v1622_v34 }
 0xc51   :  { %1724 = vrot.lane.b32.xlu1 %v3263_v37, %s3167_s23 }
 0xc55   :  { %1802 = vrot.lane.b32.xlu1 %v3387_v12, %s3152_s25 }
 0xc59   :  { %1804 = vrot.lane.b32.xlu1 %v3385_v11, %s3152_s25 }
 0xc5d   :  { %1812 = vrot.lane.b32.xlu1 %v1458_v58, %s3168_s26 }
 0xcc9   :  { %v1627_v1 = vpop.xlane.xlu1 %1626 }
 0xcca   :  { %v1629_v0 = vsub.f32 %v1621_v5, %v1627_v1  ;;  %v58_v1 = vld [vmem:[%s3549_s2] sm:$0xff]  ;;  %s3170_s2 = smov [#allocation8]  }
 0xccb   :  { %vm60_vm11 = vcmp.gt.f32.partialorder %v58_v1, 0.0  ;;  %s2589_s8 = sshll.u32 %s3170_s2, 4  ;;  %s2590_s8 = int_to_ptr.vmem [resolvable:$true] %s2589_s8 }
 0xccc   :  { %v1632_v13 = vmul.f32 1.442695, %v1629_v0  ;;  %v1983_v0 = vld [vmem:[#allocation5 + $0xb8] sm:$0xff]  ;;  %s3102_s3 = scalar_lea.vmem %s2590_s8, 256  ;;  %p3107_p11 = scmp.lt.s32.totalorder %s2590_s8, %s2590_s8 }
 0xccd   :  { %v1725_v14 = vpop.permute.xlu1 %1724  ;;  %v1624_v15 = vpop.xlane.xlu0 %1623  ;;  %p3103_p10 = scmp.ne.s32.totalorder %s2590_s8, %s3102_s3  ;;  %p3108_p12 = scmp.lt.s32.totalorder %s3102_s3, %s3102_s3 }
 0xcce   :  { %3014 = vpow2.f32 %v1632_v13  ;;  %v1628_v16 = vsub.f32 %v1620_v10, %v1624_v15  ;;  %2883 = vmatpush3.msra.mxu1 %v1725_v14  ;;  %v1968_v13 = vsel %vm60_vm11, 1, %v3157_v42  ;;  %v1982_v14 = vld [vmem:[#allocation5 + $0xb0] sm:$0xff]  ;;  %v1981_v15 = vld [vmem:[#allocation5 + $0xa8] sm:$0xff] }
 0xccf   :  { %2898 = vmatprep.subr.mxu1 %v1983_v0  ;;  %p3109_p13 = por %p3108_p12, %p3107_p11 }
 0xcd0   :  { %v1630_v17 = vmul.f32 1.442695, %v1628_v16  ;;  %v1980_v16 = vld [vmem:[#allocation5 + $0xa0] sm:$0xff] }
 0xcd1   :  { %v1803_v40 = vpop.permute.xlu1 %1802  ;;  %p3110_p0 = pnand %p3109_p13, %p3103_p10 }
 0xcd2   :  { %3016 = vpow2.f32 %v1630_v17  ;;  %v1824_v45 = vsel %vm440_vm3, %v3343_v27, %v1803_v40 }
 0xcd5   :  { %v1805_v41 = vpop.permute.xlu1 %1804 }
 0xcd6   :  { %v1825_v47 = vsel %vm440_vm3, %v3341_v26, %v1805_v41 }
 0xcd9   :  { %v1813_v43 = vpop.permute.xlu1 %1812 }
 0xcda   :  { %v1828_v52 = vsel %vm1826_vm8, %v1825_v47, %v1813_v43 }
 0xcdb   :  { %v3015_v18 = vpop.eup %3014 }
 0xcdc   :  { %v1635_v37 = vsel %vm605_vm6, %v3015_v18, 0.0 }
 0xcdd   :  { %v1639_v12 = vsel %vm440_vm3, %v1635_v37, 0.0 }
 0xcde   :  { %1640 = vadd.xlane.f32.xlu0 %v1639_v12 }
 0xcdf   :  { %v3017_v11 = vpop.eup %3016 }
 0xce0   :  { %v1634_v19 = vsel %vm604_vm7, %v3017_v11, 0.0 }
 0xce1   :  { %v1636_v20 = vsel %vm440_vm3, %v1634_v19, 0.0 }
 0xce2   :  { %1637 = vadd.xlane.f32.xlu0 %v1636_v20 }
 0xcf8   :  { %1648 = vrot.lane.b32.xlu0 %v3265_v39, %s3167_s23  ;;  %v1835_v39 = vld [vmem:[#allocation5 + $0x98] sm:$0xff] }
 0xcfc   :  { %1810 = vrot.lane.b32.xlu0 %v1382_v60, %s3168_s26 }
 0xd67   :  { %v1641_v21 = vpop.xlane.xlu0 %1640 }
 0xd68   :  { %3018 = vrcp.f32 %v1641_v21 }
 0xd6b   :  { %v1638_v22 = vpop.xlane.xlu0 %1637 }
 0xd6c   :  { %3020 = vrcp.f32 %v1638_v22 }
 0xd6f   :  { %v1649_v23 = vpop.permute.xlu0 %1648 }
 0xd70   :  { %2878 = vmatpush3.msra.mxu0 %v1649_v23 }
 0xd71   :  { %2887 = vmatprep.subr.mxu0 %v1835_v39 }
 0xd73   :  { %v1811_v44 = vpop.permute.xlu0 %1810 }
 0xd74   :  { %v1827_v48 = vsel %vm1826_vm8, %v1824_v45, %v1811_v44 }
 0xd75   :  { %v3019_v24 = vpop.eup %3018 }
 0xd76   :  { %v1645_v25 = vmul.f32 %v3019_v24, %v1635_v37  ;;  %v2649_v24 = vld [vmem:[#allocation2 + $0x9] ss:$0 sm:$0xff] }
 0xd78   :  { %v1647_v28 = vsel %vm605_vm6, %v1645_v25, 0.0 }
 0xd79   :  { %v3021_v29 = vpop.eup %3020  ;;  %2885 = vmatmul.mubr.msk.f32.vlgmr.msra.gmra.mxu1 %vm440_vm3, %v1647_v28 }
 0xd7a   :  { %v1644_v30 = vmul.f32 %v3021_v29, %v1634_v19  ;;  %2899 = vmatpush3.msra.mxu1 %v1983_v0 }
 0xd7b   :  { %2900 = vmatprep.subr.mxu1 %v1982_v14 }
 0xd7c   :  { %v1646_v31 = vsel %vm604_vm7, %v1644_v30, 0.0  ;;  %2901 = vmatpush3.msra.mxu1 %v1982_v14 }
 0xd7d   :  { %2880 = vmatmul.mubr.msk.f32.vlgmr.msra.gmra.mxu0 %vm440_vm3, %v1646_v31  ;;  %2902 = vmatprep.subr.mxu1 %v1981_v15 }
 0xd7e   :  { %2888 = vmatpush3.msra.mxu0 %v1835_v39  ;;  %2903 = vmatpush3.msra.mxu1 %v1981_v15 }
 0xd7f   :  { %2889 = vmatprep.subr.mxu0 %v1834_v32  ;;  %2904 = vmatprep.subr.mxu1 %v1980_v16 }
 0xd80   :  { %2890 = vmatpush3.msra.mxu0 %v1834_v32  ;;  %2905 = vmatpush3.msra.mxu1 %v1980_v16 }
 0xd81   :  { %2891 = vmatprep.subr.mxu0 %v1833_v33 }
 0xd82   :  { %2892 = vmatpush3.msra.mxu0 %v1833_v33 }
 0xd83   :  { %2893 = vmatprep.subr.mxu0 %v1832_v50 }
 0xd84   :  { %2894 = vmatpush3.msra.mxu0 %v1832_v50  ;;  %v2650_v50 = vld [vmem:[#allocation2 + $0xa] ss:$0 sm:$0xff] }
 0xe39   :  { %v1796_v35 = vpop.f32.mrf.mxu1 }
 0xe3a   :  { %1820 = vrot.lane.b32.xlu1 %v1796_v35, %s3169_s27 }
 0xe3b   :  { %v2886_v36 = vpop.f32.mrf.mxu1 }
 0xe3d   :  { %v1720_v51 = vpop.f32.mrf.mxu0 }
 0xe3e   :  { %1818 = vrot.lane.b32.xlu0 %v1720_v51, %s3169_s27 }
 0xe3f   :  { %v2881_v38 = vpop.f32.mrf.mxu0 }
 0xeac   :  { %v1821_v46 = vpop.permute.xlu1 %1820 }
 0xead   :  { %v1831_v54 = vsel %vm1829_vm9, %v1828_v52, %v1821_v46 }
 0xeb0   :  { %v1819_v49 = vpop.permute.xlu0 %1818 }
 0xeb1   :  { %v1830_v53 = vsel %vm1829_vm9, %v1827_v48, %v1819_v49 }
 0xeb2   :  { %2895 = vmatprep.mubr.msk.f32.mxu0 %vm64_vm0, %v1830_v53  ;;  %v2655_v53 = vld [vmem:[#allocation2 + $0x15] ss:$0 sm:$0xff] }
 0xeb3   :  { %2896 = vmatmul.mubr.msk.f32.vlgmr.msra.gmra.mxu0 %vm64_vm0, %v1831_v54  ;;  %v2656_v54 = vld [vmem:[#allocation2 + $0x16] ss:$0 sm:$0xff] }
 0xf73   :  { %v2897_v56 = vpop.f32.mrf.mxu0 }
 0xf74   :  { %v1919_v57 = vadd.f32 %v2897_v56, %v2645_v55 }
 0xf75   :  { %v1913_v58 = vpop.f32.mrf.mxu0 }
 0xf76   :  { %v3460_v27 = vadd.f32 %v1919_v57, %v3242_v63  ;;  %v1914_v59 = vadd.f32 %v2645_v55, %v1913_v58  ;;  %v1969_v63 = vsel %vm61_vm10, 1, %v3157_v42  ;;  %v2648_v42 = vld [vmem:[#allocation2 + $0x8] ss:$0 sm:$0xff] }
 0xf78   :  { %v3463_v60 = vadd.f32 %v1914_v59, %v3245_v3  ;;  %v1933_v26 = vsel %vm64_vm0, %v3460_v27, 0.0 }
 0xf79   :  { %1934 = vadd.xlane.f32.xlu1 %v1933_v26 }
 0xf7a   :  { %v1930_v61 = vsel %vm64_vm0, %v3463_v60, 0.0 }
 0xf7b   :  { %1931 = vadd.xlane.f32.xlu0 %v1930_v61  ;;  %v2657_v61 = vld [vmem:[#allocation2 + $0x17] ss:$0 sm:$0xff] }
 0xf8a   :  { %1974 = vperm.xlu1 %2973, %v1969_v63  }
0x1002   :  { %v1935_v2 = vpop.xlane.xlu1 %1934 }
0x1003   :  { %v1937_v4 = vmul.f32 0.03125, %v1935_v2 }
0x1004   :  { %v1932_v3 = vpop.xlane.xlu0 %1931 }
0x1005   :  { %v1939_v5 = vsub.f32 %v3460_v27, %v1937_v4  ;;  %v1936_v6 = vmul.f32 0.03125, %v1932_v3 }
0x1006   :  { %v3483_v29 = vpop.permute.xlu1 %1974 }
0x1007   :  { %v1938_v7 = vsub.f32 %v3463_v60, %v1936_v6  ;;  %v1941_v8 = vmul.f32 %v1939_v5, %v1939_v5  ;;  %vm1977_vm13 = vcmp.eq.s32.totalorder %v3483_v29, 1 }
0x1009   :  { %v1945_v9 = vsel %vm64_vm0, %v1941_v8, 0.0  ;;  %v1940_v10 = vmul.f32 %v1938_v7, %v1938_v7  ;;  %v2658_v8 = vld [vmem:[#allocation2 + $0xb] ss:$0 sm:$0xff] }
0x100a   :  { %1946 = vadd.xlane.f32.xlu0 %v1945_v9 }
0x100b   :  { %v1942_v34 = vsel %vm64_vm0, %v1940_v10, 0.0 }
0x100e   :  { %1943 = vadd.xlane.f32.xlu0 %v1942_v34 }
0x1024   :  { %1971 = vperm.xlu0 %2972, %v1968_v13  }
0x1093   :  { %v1947_v17 = vpop.xlane.xlu0 %1946 }
0x1094   :  { %v1949_v18 = vmul.f32 0.03125, %v1947_v17 }
0x1096   :  { %v1951_v37 = vadd.f32 1e-05, %v1949_v18 }
0x1097   :  { %v1944_v12 = vpop.xlane.xlu0 %1943 }
0x1098   :  { %3022 = vrsqrt.f32 %v1951_v37  ;;  %v1948_v11 = vmul.f32 0.03125, %v1944_v12 }
0x109a   :  { %v1950_v19 = vadd.f32 1e-05, %v1948_v11 }
0x109c   :  { %3024 = vrsqrt.f32 %v1950_v19 }
0x109f   :  { %v3481_v28 = vpop.permute.xlu0 %1971 }
0x10a0   :  { %vm1976_vm12 = vcmp.eq.s32.totalorder %v3481_v28, 1 }
0x10a5   :  { %v3023_v20 = vpop.eup %3022 }
0x10a6   :  { %v1955_v21 = vmul.f32 %v3023_v20, %v1939_v5 }
0x10a8   :  { %v1961_v23 = vmul.f32 %v2648_v42, %v1955_v21 }
0x10a9   :  { %v3025_v22 = vpop.eup %3024 }
0x10aa   :  { %v1954_v25 = vmul.f32 %v3025_v22, %v1938_v7  ;;  %v1967_v31 = vadd.f32 %v2649_v24, %v1961_v23 }
0x10ac   :  { %v1960_v30 = vmul.f32 %v2648_v42, %v1954_v25  ;;  %v1979_v33 = vsel %vm1977_vm13, %v1967_v31, 0.0  ;;  %v2196_v25 = vld [vmem:[#allocation5 + $0xd0] sm:$0xff]  ;;  %v2194_v31 = vld [vmem:[#allocation5 + $0xc0] sm:$0xff] }
0x10ae   :  { %v1966_v39 = vadd.f32 %v2649_v24, %v1960_v30  ;;  %v2197_v24 = vld [vmem:[#allocation5 + $0xd8] sm:$0xff]  ;;  %v2195_v30 = vld [vmem:[#allocation5 + $0xc8] sm:$0xff] }
0x10af   :  { %2909 = vmatprep.subr.mxu0 %v2197_v24 }
0x10b0   :  { %v1978_v32 = vsel %vm1976_vm12, %v1966_v39, 0.0  ;;  %2910 = vmatpush3.msra.mxu0 %v2197_v24  ;;  %v2667_v24 = vld [vmem:[#allocation2 + $0x10] ss:$0 sm:$0xff] }
0x10b1   :  { %2906 = vmatprep.mubr.msk.f32.mxu1 %vm64_vm0, %v1978_v32  ;;  %2911 = vmatprep.subr.mxu0 %v2196_v25 }
0x10b2   :  { %2907 = vmatmul.mubr.msk.f32.vlgmr.msra.gmra.mxu1 %vm64_vm0, %v1979_v33  ;;  %2912 = vmatpush3.msra.mxu0 %v2196_v25 }
0x10b3   :  { %2913 = vmatprep.subr.mxu0 %v2195_v30 }
0x10b4   :  { %2914 = vmatpush3.msra.mxu0 %v2195_v30 }
0x10b5   :  { %2915 = vmatprep.subr.mxu0 %v2194_v31 }
0x10b6   :  { %2916 = vmatpush3.msra.mxu0 %v2194_v31 }
0x1172   :  { %v2908_v35 = vpop.f32.mrf.mxu1 }
0x1173   :  { %v2067_v36 = vadd.f32 %v2908_v35, %v2650_v50 }
0x1174   :  { %v2061_v51 = vpop.f32.mrf.mxu1 }
0x1175   :  { %v2654_v38 = vmul.f32 -1.442695, %v2067_v36  ;;  %v2062_v40 = vadd.f32 %v2650_v50, %v2061_v51 }
0x1177   :  { %v2653_v41 = vmul.f32 -1.442695, %v2062_v40  ;;  %3026 = vpow2.f32 %v2654_v38  ;;  %v2659_v38 = vld [vmem:[#allocation2 + $0xc] ss:$0 sm:$0xff] }
0x1179   :  { %3028 = vpow2.f32 %v2653_v41  ;;  %v2660_v41 = vld [vmem:[#allocation2 + $0xd] ss:$0 sm:$0xff] }
0x1184   :  { %v3027_v43 = vpop.eup %3026 }
0x1185   :  { %v2077_v46 = vadd.f32 1.0, %v3027_v43 }
0x1186   :  { %v3029_v44 = vpop.eup %3028 }
0x1187   :  { %v2076_v45 = vadd.f32 1.0, %v3029_v44 }
0x1189   :  { %3030 = vrcp.f32 %v2076_v45 }
0x118a   :  { %3032 = vrcp.f32 %v2077_v46 }
0x1196   :  { %v3031_v47 = vpop.eup %3030 }
0x1197   :  { %2084 = vrot.lane.b32.xlu1 %v3031_v47, %s3156_s0  ;;  %v3033_v48 = vpop.eup %3032 }
0x119b   :  { %2086 = vrot.lane.b32.xlu1 %v3033_v48, %s3156_s0 }
0x1209   :  { %v2085_v49 = vpop.permute.xlu1 %2084 }
0x120a   :  { %v2090_v52 = vmul.f32 %v2085_v49, %v2062_v40 }
0x120c   :  { %v2094_v55 = vrot.slane %v2090_v52, 7  ;;  %v2101_v56 = vrot.slane %v2090_v52, 1  ;;  %v2120_v63 = vmul.f32 %v2656_v54, %v2090_v52 }
0x120d   :  { %v2087_v57 = vpop.permute.xlu1 %2086 }
0x120e   :  { %v2099_v58 = vsel %vm2098_vm14, 0.0, %v2094_v55  ;;  %v2106_v59 = vsel %vm2105_vm15, %v2101_v56, 0.0  ;;  %v2091_v26 = vmul.f32 %v2087_v57, %v2067_v36 }
0x120f   :  { %v2113_v62 = vmul.f32 %v2655_v53, %v2099_v58  ;;  %v2129_v5 = vmul.f32 %v2657_v61, %v2106_v59 }
0x1210   :  { %v2095_v2 = vrot.slane %v2091_v26, 7  ;;  %v2102_v4 = vrot.slane %v2091_v26, 1  ;;  %v2121_v10 = vmul.f32 %v2656_v54, %v2091_v26 }
0x1211   :  { %v2122_v3 = vadd.f32 %v2120_v63, %v2113_v62 }
0x1212   :  { %v2100_v6 = vsel %vm2098_vm14, 0.0, %v2095_v2  ;;  %v2107_v7 = vsel %vm2105_vm15, %v2102_v4, 0.0 }
0x1213   :  { %v2114_v9 = vmul.f32 %v2655_v53, %v2100_v6  ;;  %v2131_v34 = vadd.f32 %v2129_v5, %v2122_v3  ;;  %v2130_v13 = vmul.f32 %v2657_v61, %v2107_v7  ;;  %v2663_v61 = vld [vmem:[#allocation2 + $0xe] ss:$0 sm:$0xff] }
0x1215   :  { %v2138_v1 = vadd.f32 %v2658_v8, %v2131_v34  ;;  %v2123_v0 = vadd.f32 %v2121_v10, %v2114_v9 }
0x1217   :  { %v2142_v14 = vsel %vm64_vm0, %v2138_v1, 0.0  ;;  %v2132_v15 = vadd.f32 %v2130_v13, %v2123_v0 }
0x1218   :  { %2143 = vadd.xlane.f32.xlu1 %v2142_v14 }
0x1219   :  { %v2139_v16 = vadd.f32 %v2658_v8, %v2132_v15  ;;  %v2331_v15 = vld [vmem:[#allocation5 + $0xf8] sm:$0xff] }
0x121a   :  { %2920 = vmatprep.subr.mxu1 %v2331_v15 }
0x121b   :  { %v2145_v17 = vsel %vm64_vm0, %v2139_v16, 0.0  ;;  %2921 = vmatpush3.msra.mxu1 %v2331_v15 }
0x121c   :  { %2146 = vadd.xlane.f32.xlu0 %v2145_v17  ;;  %v2329_v17 = vld [vmem:[#allocation5 + $0xe8] sm:$0xff] }
0x12a1   :  { %v2144_v18 = vpop.xlane.xlu1 %2143 }
0x12a2   :  { %v2148_v37 = vmul.f32 0.03125, %v2144_v18  ;;  %v2328_v18 = vld [vmem:[#allocation5 + $0xe0] sm:$0xff] }
0x12a4   :  { %v2150_v12 = vsub.f32 %v2138_v1, %v2148_v37 }
0x12a5   :  { %v2147_v11 = vpop.xlane.xlu0 %2146 }
0x12a6   :  { %v2149_v19 = vmul.f32 0.03125, %v2147_v11  ;;  %v2152_v20 = vmul.f32 %v2150_v12, %v2150_v12 }
0x12a8   :  { %v2151_v42 = vsub.f32 %v2139_v16, %v2149_v19  ;;  %v2154_v21 = vsel %vm64_vm0, %v2152_v20, 0.0  ;;  %v2330_v16 = vld [vmem:[#allocation5 + $0xf0] sm:$0xff] }
0x12a9   :  { %2155 = vadd.xlane.f32.xlu1 %v2154_v21  ;;  %2922 = vmatprep.subr.mxu1 %v2330_v16 }
0x12aa   :  { %v2153_v22 = vmul.f32 %v2151_v42, %v2151_v42  ;;  %2923 = vmatpush3.msra.mxu1 %v2330_v16 }
0x12ab   :  { %2924 = vmatprep.subr.mxu1 %v2329_v17 }
0x12ac   :  { %v2157_v23 = vsel %vm64_vm0, %v2153_v22, 0.0  ;;  %2925 = vmatpush3.msra.mxu1 %v2329_v17  ;;  %v2666_v22 = vld [vmem:[#allocation2 + $0xf] ss:$0 sm:$0xff] }
0x12ad   :  { %2158 = vadd.xlane.f32.xlu1 %v2157_v23  ;;  %2926 = vmatprep.subr.mxu1 %v2328_v18 }
0x12ae   :  { %2927 = vmatpush3.msra.mxu1 %v2328_v18 }
0x1332   :  { %v2156_v39 = vpop.xlane.xlu1 %2155 }
0x1333   :  { %v2160_v32 = vmul.f32 0.03125, %v2156_v39 }
0x1335   :  { %v2162_v33 = vadd.f32 1e-05, %v2160_v32 }
0x1336   :  { %v2159_v50 = vpop.xlane.xlu1 %2158 }
0x1337   :  { %3034 = vrsqrt.f32 %v2162_v33  ;;  %v2161_v35 = vmul.f32 0.03125, %v2159_v50  ;;  %v2439_v50 = vld [vmem:[#allocation5 + $0x138] sm:$0xff] }
0x1338   :  { %2931 = vmatprep.subr.mxu0 %v2439_v50 }
0x1339   :  { %v2163_v36 = vadd.f32 1e-05, %v2161_v35  ;;  %v2438_v35 = vld [vmem:[#allocation5 + $0x130] sm:$0xff] }
0x133b   :  { %3036 = vrsqrt.f32 %v2163_v36  ;;  %v2437_v36 = vld [vmem:[#allocation5 + $0x128] sm:$0xff] }
0x1344   :  { %v3035_v51 = vpop.eup %3034 }
0x1345   :  { %v2166_v40 = vmul.f32 %v3035_v51, %v2150_v12  ;;  %v2436_v51 = vld [vmem:[#allocation5 + $0x120] sm:$0xff] }
0x1347   :  { %v2172_v43 = vmul.f32 %v2659_v38, %v2166_v40  ;;  %v2434_v40 = vld [vmem:[#allocation5 + $0x110] sm:$0xff] }
0x1348   :  { %v3037_v44 = vpop.eup %3036 }
0x1349   :  { %v2167_v45 = vmul.f32 %v3037_v44, %v2151_v42  ;;  %v2178_v46 = vadd.f32 %v2660_v41, %v2172_v43  ;;  %v2432_v43 = vld [vmem:[#allocation5 + $0x100] sm:$0xff]  ;;  %v2668_v44 = vld [vmem:[#allocation2 + $0x11] ss:$0 sm:$0xff] }
0x134b   :  { %v2173_v47 = vmul.f32 %v2659_v38, %v2167_v45  ;;  %v2661_v48 = vmul.f32 -1.442695, %v2178_v46  ;;  %v2435_v38 = vld [vmem:[#allocation5 + $0x118] sm:$0xff] }
0x134d   :  { %v2179_v49 = vadd.f32 %v2660_v41, %v2173_v47  ;;  %3038 = vpow2.f32 %v2661_v48  ;;  %v2433_v41 = vld [vmem:[#allocation5 + $0x108] sm:$0xff] }
0x134f   :  { %v2662_v52 = vmul.f32 -1.442695, %v2179_v49 }
0x1351   :  { %3040 = vpow2.f32 %v2662_v52 }
0x135a   :  { %v3039_v53 = vpop.eup %3038 }
0x135b   :  { %v2186_v54 = vadd.f32 1.0, %v3039_v53 }
0x135d   :  { %3042 = vrcp.f32 %v2186_v54 }
0x135e   :  { %v3041_v55 = vpop.eup %3040 }
0x135f   :  { %v2187_v56 = vadd.f32 1.0, %v3041_v55 }
0x1361   :  { %3044 = vrcp.f32 %v2187_v56 }
0x136a   :  { %v3043_v57 = vpop.eup %3042 }
0x136b   :  { %v2192_v58 = vmul.f32 %v3043_v57, %v2178_v46 }
0x136d   :  { %2917 = vmatprep.mubr.msk.f32.mxu0 %vm64_vm0, %v2192_v58 }
0x136e   :  { %v3045_v59 = vpop.eup %3044 }
0x136f   :  { %v2193_v26 = vmul.f32 %v3045_v59, %v2179_v49 }
0x1371   :  { %2918 = vmatmul.mubr.msk.f32.vlgmr.msra.gmra.mxu0 %vm64_vm0, %v2193_v26 }
0x1372   :  { %2932 = vmatpush3.msra.mxu0 %v2439_v50 }
0x1373   :  { %2933 = vmatprep.subr.mxu0 %v2438_v35 }
0x1374   :  { %2934 = vmatpush3.msra.mxu0 %v2438_v35 }
0x1375   :  { %2935 = vmatprep.subr.mxu0 %v2437_v36 }
0x1376   :  { %2936 = vmatpush3.msra.mxu0 %v2437_v36 }
0x1377   :  { %2937 = vmatprep.subr.mxu0 %v2436_v51 }
0x1378   :  { %2938 = vmatpush3.msra.mxu0 %v2436_v51 }
0x1379   :  { %2939 = vmatprep.subr.mxu0 %v2435_v38 }
0x137a   :  { %2940 = vmatpush3.msra.mxu0 %v2435_v38 }
0x137b   :  { %2941 = vmatprep.subr.mxu0 %v2434_v40 }
0x137c   :  { %2942 = vmatpush3.msra.mxu0 %v2434_v40 }
0x137d   :  { %2943 = vmatprep.subr.mxu0 %v2433_v41 }
0x137e   :  { %2944 = vmatpush3.msra.mxu0 %v2433_v41 }
0x137f   :  { %2945 = vmatprep.subr.mxu0 %v2432_v43 }
0x1380   :  { %2946 = vmatpush3.msra.mxu0 %v2432_v43 }
0x1431   :  { %v2919_v62 = vpop.f32.mrf.mxu0 }
0x1432   :  { %v2281_v63 = vadd.f32 %v2919_v62, %v2663_v61 }
0x1433   :  { %v2275_v2 = vpop.f32.mrf.mxu0 }
0x1434   :  { %v2276_v4 = vadd.f32 %v2663_v61, %v2275_v2  ;;  %v2285_v3 = vsel %vm1977_vm13, %v2281_v63, 0.0  ;;  %v2673_v61 = vld [vmem:[#allocation2 + $0x12] ss:$0 sm:$0xff] }
0x1435   :  { %v3513_v7 = vadd.f32 %v2285_v3, %v3460_v27 }
0x1436   :  { %v2284_v5 = vsel %vm1976_vm12, %v2276_v4, 0.0 }
0x1437   :  { %v3510_v6 = vadd.f32 %v2284_v5, %v3463_v60  ;;  %v2293_v9 = vsel %vm64_vm0, %v3513_v7, 0.0 }
0x1439   :  { %v2290_v8 = vsel %vm64_vm0, %v3510_v6, 0.0 }
0x143a   :  { %2291 = vadd.xlane.f32.xlu1 %v2290_v8 }
0x143e   :  { %2294 = vadd.xlane.f32.xlu1 %v2293_v9 }
0x14c3   :  { %v2292_v10 = vpop.xlane.xlu1 %2291 }
0x14c4   :  { %v2296_v29 = vmul.f32 0.03125, %v2292_v10 }
0x14c6   :  { %v2298_v34 = vsub.f32 %v3510_v6, %v2296_v29 }
0x14c7   :  { %v2295_v28 = vpop.xlane.xlu1 %2294 }
0x14c8   :  { %v2297_v1 = vmul.f32 0.03125, %v2295_v28  ;;  %v2300_v0 = vmul.f32 %v2298_v34, %v2298_v34 }
0x14ca   :  { %v2299_v60 = vsub.f32 %v3513_v7, %v2297_v1  ;;  %v2302_v27 = vsel %vm64_vm0, %v2300_v0, 0.0 }
0x14cb   :  { %2303 = vadd.xlane.f32.xlu0 %v2302_v27 }
0x14cc   :  { %v2301_v13 = vmul.f32 %v2299_v60, %v2299_v60 }
0x14ce   :  { %v2305_v14 = vsel %vm64_vm0, %v2301_v13, 0.0 }
0x14cf   :  { %2306 = vadd.xlane.f32.xlu1 %v2305_v14 }
0x1554   :  { %v2304_v37 = vpop.xlane.xlu0 %2303 }
0x1555   :  { %v2308_v12 = vmul.f32 0.03125, %v2304_v37 }
0x1557   :  { %v2310_v11 = vadd.f32 1e-05, %v2308_v12 }
0x1558   :  { %v2307_v19 = vpop.xlane.xlu1 %2306 }
0x1559   :  { %3046 = vrsqrt.f32 %v2310_v11  ;;  %v2309_v20 = vmul.f32 0.03125, %v2307_v19 }
0x155b   :  { %v2311_v42 = vadd.f32 1e-05, %v2309_v20 }
0x155d   :  { %3048 = vrsqrt.f32 %v2311_v42 }
0x1566   :  { %v3047_v21 = vpop.eup %3046 }
0x1567   :  { %v2314_v23 = vmul.f32 %v3047_v21, %v2298_v34 }
0x1569   :  { %v2320_v25 = vmul.f32 %v2666_v22, %v2314_v23 }
0x156a   :  { %v3049_v30 = vpop.eup %3048 }
0x156b   :  { %v2315_v31 = vmul.f32 %v3049_v30, %v2299_v60  ;;  %v2326_v39 = vadd.f32 %v2667_v24, %v2320_v25 }
0x156d   :  { %v2321_v32 = vmul.f32 %v2666_v22, %v2315_v31  ;;  %2928 = vmatprep.mubr.msk.f32.mxu1 %vm64_vm0, %v2326_v39 }
0x156f   :  { %v2327_v33 = vadd.f32 %v2667_v24, %v2321_v32 }
0x1571   :  { %2929 = vmatmul.mubr.msk.f32.vlgmr.msra.gmra.mxu1 %vm64_vm0, %v2327_v33 }
0x1631   :  { %v2930_v45 = vpop.f32.mrf.mxu1 }
0x1632   :  { %v2415_v46 = vadd.f32 %v2930_v45, %v2668_v44 }
0x1633   :  { %v2409_v47 = vpop.f32.mrf.mxu1 }
0x1634   :  { %v2672_v48 = vmul.f32 -1.442695, %v2415_v46  ;;  %v2410_v49 = vadd.f32 %v2668_v44, %v2409_v47 }
0x1636   :  { %3050 = vpow2.f32 %v2672_v48  ;;  %v2671_v52 = vmul.f32 -1.442695, %v2410_v49 }
0x1638   :  { %3052 = vpow2.f32 %v2671_v52 }
0x1643   :  { %v3051_v53 = vpop.eup %3050 }
0x1644   :  { %v2425_v54 = vadd.f32 1.0, %v3051_v53 }
0x1645   :  { %v3053_v55 = vpop.eup %3052 }
0x1646   :  { %v2424_v56 = vadd.f32 1.0, %v3053_v55  ;;  %3054 = vrcp.f32 %v2425_v54 }
0x1648   :  { %3056 = vrcp.f32 %v2424_v56 }
0x1653   :  { %v3055_v57 = vpop.eup %3054 }
0x1654   :  { %v2431_v26 = vmul.f32 %v3055_v57, %v2415_v46 }
0x1655   :  { %v3057_v58 = vpop.eup %3056 }
0x1656   :  { %v2430_v59 = vmul.f32 %v3057_v58, %v2410_v49 }
0x1658   :  { %2947 = vmatprep.mubr.msk.f32.mxu0 %vm221_vm1, %v2430_v59 }
0x1659   :  { %2948 = vmatmul.mubr.msk.f32.vlgmr.msra.gmra.mxu0 %vm221_vm1, %v2431_v26 }
0x1719   :  { %v2949_v62 = vpop.f32.mrf.mxu0 }
0x171a   :  { %v2523_v63 = vadd.f32 %v2949_v62, %v2673_v61 }
0x171b   :  { %v2517_v2 = vpop.f32.mrf.mxu0 }
0x171c   :  { %v2527_v4 = vmul.f32 0.5, %v2523_v63  ;;  %v2518_v3 = vadd.f32 %v2673_v61, %v2517_v2 }
0x171e   :  { %v2526_v5 = vmul.f32 0.5, %v2518_v3  ;;  %v2529_v8 = vadd.f32 %v2527_v4, %v3513_v7 }
0x1720   :  { %v2535_v9 = vsel %vm64_vm0, %v2529_v8, 0.0  ;;  %v2528_v10 = vadd.f32 %v2526_v5, %v3510_v6 }
0x1721   :  { %2536 = vadd.xlane.f32.xlu1 %v2535_v9 }
0x1722   :  { %v2532_v29 = vsel %vm64_vm0, %v2528_v10, 0.0 }
0x1723   :  { %2533 = vadd.xlane.f32.xlu0 %v2532_v29 }
0x17aa   :  { %v2537_v34 = vpop.xlane.xlu1 %2536 }
0x17ab   :  { %v2539_v28 = vmul.f32 0.03125, %v2537_v34 }
0x17ac   :  { %v2534_v1 = vpop.xlane.xlu0 %2533 }
0x17ad   :  { %v2541_v0 = vsub.f32 %v2529_v8, %v2539_v28  ;;  %v2538_v60 = vmul.f32 0.03125, %v2534_v1 }
0x17af   :  { %v2540_v27 = vsub.f32 %v2528_v10, %v2538_v60  ;;  %v2543_v13 = vmul.f32 %v2541_v0, %v2541_v0 }
0x17b1   :  { %v2547_v14 = vsel %vm64_vm0, %v2543_v13, 0.0  ;;  %v2542_v15 = vmul.f32 %v2540_v27, %v2540_v27 }
0x17b2   :  { %2548 = vadd.xlane.f32.xlu1 %v2547_v14 }
0x17b3   :  { %v2544_v7 = vsel %vm64_vm0, %v2542_v15, 0.0 }
0x17b4   :  { %2545 = vadd.xlane.f32.xlu0 %v2544_v7 }
0x17b5   :  { %3113 = shalt.err (!%p3110_p0)
}
0x17b6   :  { %2595 = dma.vmem_to_hbm [thread:$0]  %s2590_s8, 256, %s3553_s6, [#allocation9], %s3151_s24, %s3151_s24, %s3152_s25   ;;  %v2676_v19 = vld [vmem:[#allocation2 + $0x13] ss:$0 sm:$0xff]  ;;  %v2677_v21 = vld [vmem:[#allocation2 + $0x14] ss:$0 sm:$0xff] }
0x17b7   :  { %s3171_s11 = smov [#allocation7]  }
0x17b8   :  { %s2577_s0 = sshll.u32 %s3171_s11, 4  ;;  %s2578_s0 = int_to_ptr.vmem [resolvable:$true] %s2577_s0 }
0x17b9   :  { %s3122_s6 = scalar_lea.vmem %s2578_s0, 256  ;;  %p3127_p2 = scmp.lt.s32.totalorder %s2578_s0, %s2578_s0 }
0x17ba   :  { %p3123_p1 = scmp.ne.s32.totalorder %s2578_s0, %s3122_s6  ;;  %p3128_p3 = scmp.lt.s32.totalorder %s3122_s6, %s3122_s6 }
0x17bc   :  { %p3129_p4 = por %p3128_p3, %p3127_p2 }
0x17be   :  { %p3130_p5 = pnand %p3129_p4, %p3123_p1 }
0x183b   :  { %v2549_v6 = vpop.xlane.xlu1 %2548 }
0x183c   :  { %v2551_v16 = vmul.f32 0.03125, %v2549_v6 }
0x183d   :  { %v2546_v17 = vpop.xlane.xlu0 %2545 }
0x183e   :  { %v2553_v18 = vadd.f32 1e-05, %v2551_v16  ;;  %v2550_v37 = vmul.f32 0.03125, %v2546_v17 }
0x1840   :  { %3058 = vrsqrt.f32 %v2553_v18  ;;  %v2552_v12 = vadd.f32 1e-05, %v2550_v37 }
0x1842   :  { %3060 = vrsqrt.f32 %v2552_v12 }
0x184d   :  { %v3059_v11 = vpop.eup %3058 }
0x184e   :  { %v2557_v20 = vmul.f32 %v3059_v11, %v2541_v0 }
0x184f   :  { %v3061_v42 = vpop.eup %3060 }
0x1850   :  { %v2556_v22 = vmul.f32 %v3061_v42, %v2540_v27  ;;  %v2563_v23 = vmul.f32 %v2676_v19, %v2557_v20 }
0x1852   :  { %v2562_v24 = vmul.f32 %v2676_v19, %v2556_v22  ;;  %v2569_v25 = vadd.f32 %v2677_v21, %v2563_v23 }
0x1854   :  { %v2568_v30 = vadd.f32 %v2677_v21, %v2562_v24  ;;  %2571 = vst.msk [vmem:[#allocation7 + $0x8] sm:$0xff] %vm64_vm0, %v2569_v25 }
0x1856   :  { %2570 = vst.msk [vmem:[#allocation7] sm:$0xff] %vm64_vm0, %v2568_v30 }
0x1857   :  { %3133 = shalt.err (!%p3130_p5)
}
0x1858   :  { %2583 = dma.vmem_to_hbm [thread:$0]  %s2578_s0, 256, %s3552_s5, [#allocation4], %s3151_s24, %s3151_s24, %s3152_s25  }
0x1859   :  { %3146 = dma.done.wait [#allocation4], 256  }
0x185a   :  { %3147 = vsyncadd [#allocation4], 4294967040 }
0x185b   :  { %3148 = dma.done.wait [#allocation9], 256  }
0x185c   :  { %3149 = vsyncadd [#allocation9], 4294967040 }
0x185d   :  { %2602 = vsyncpa [#allocation3], 1 }
0x185e   :  { %2603 = vsyncpa [#allocation6], 1 }
0x185f   :  { %2604 = vsyncpa [#allocation4], 1 }
0x1860   :  { %2605 = vsyncpa [#allocation9], 1 }

</bundles_post_ra>
